<compile_context>
chip_gen: v5e
topology: v5e:2x2
jax: 0.10.0
libtpu: 0.0.40
codegen_flags: <defaults>
</compile_context>

<pallas_src>
import functools

import numpy as np
import jax
import jax.numpy as jnp
from jax.experimental import pallas as pl
from jax.experimental.pallas import tpu as pltpu

NEG_SLOPE = 0.01  # nn.LeakyReLU() default


def _leaky(x):
    return jnp.where(x >= 0, x, NEG_SLOPE * x)


def _ru8(x):
    return ((x + 7) // 8) * 8


def _largest_divisor_leq(n, cap):
    for d in range(min(n, cap), 0, -1):
        if n % d == 0:
            return d
    return 1


# ------------------------------------------------------------------
# Fused Pallas kernel (Bt batch elements per grid step)
# ------------------------------------------------------------------

def _actor_fused_kernel(
    # ---- per-batch-block data ----
    ngT_ref,      # (Bt, Fn+F, N)   [node_inputs ; gcn_outputs]^T
    dagT_ref,     # (Bt, F, J)      dag summary^T     (node branch)
    globT_ref,    # (Bt, F, 1)      global summary^T  (node branch)
    job_ref,      # (Bt, J, Fj)     job features      (job branch)
    dag_ref,      # (Bt, J, F)      dag summary       (job branch)
    glob_ref,     # (Bt, 1, F)      global summary    (job branch)
    nmask_ref,    # (Bt, 1, N)
    jmask_ref,    # (Bt, J, L)
    # ---- shared data / packed parameter slabs ----
    bmapT_ref,    # (J, N)          backward map^T
    nw_ref,       # (128, >=32)     node MLP weights (transposed), row-stacked
    nb_ref,       # (32, 4)         node MLP biases as columns
    jb_ref,       # (R1, 32)        job layer-1 weights (row-major) + bias row
    jc_ref,       # (R2, 32*L)      job level-block-diagonal chain + bias rows
    # ---- outputs ----
    node_out_ref,  # (Bt, 1, N)
    job_out_ref,   # (Bt, J, L)
    *, fn, fj, f, nlev, bt,
):
    f32 = jnp.float32
    L = nlev

    # ----- unpack node weights once (static, 8-aligned row offsets) -----
    nw1ng = nw_ref[0:32, 0:fn + f]      # (32, Fn+F)  node+gcn rows of W1^T
    nw1dg = nw_ref[32:64, 0:f]          # (32, F)     dag-summary rows
    nw1gl = nw_ref[64:96, 0:f]          # (32, F)     global-summary rows
    nw2 = nw_ref[96:112, 0:32]          # (16, 32)
    nw3 = nw_ref[112:120, 0:16]         # (8, 16)
    nw4 = nw_ref[120:121, 0:8]          # (1, 8)
    nb1 = nb_ref[0:32, 0:1]
    nb2 = nb_ref[0:16, 1:2]
    nb3 = nb_ref[0:8, 2:3]
    nb4 = nb_ref[0:1, 3:4]

    # ----- unpack job layer-1 weights (row-major) -----
    ob = _ru8(fj)
    oc = ob + _ru8(f)
    od = oc + _ru8(f)
    jw1a = jb_ref[0:fj, :]              # (Fj, 32)
    jw1b = jb_ref[ob:ob + f, :]         # (F, 32)
    jw1c = jb_ref[oc:oc + f, :]         # (F, 32)
    jb1 = jb_ref[od:od + 1, :]          # (1, 32)

    # ----- unpack the level-block-diagonal job chain -----
    o2 = 32
    o3 = o2 + 32 * L
    o4 = o3 + 16 * L
    orow = o4 + 8 * L
    t1 = jc_ref[0:32, 0:32 * L]                 # (32, 32L)  broadcast-over-levels
    w2bd = jc_ref[o2:o3, 0:16 * L]              # (32L, 16L) = diag_L(W2)
    w3bd = jc_ref[o3:o4, 0:8 * L]               # (16L, 8L)  = diag_L(W3)
    w4bd = jc_ref[o4:orow, 0:L]                 # (8L, L)    = diag_L(W4)
    levrow = jc_ref[orow:orow + 1, 0:32 * L]    # level_l * W1[level-row]
    b2row = jc_ref[orow + 8:orow + 9, 0:16 * L]
    b3row = jc_ref[orow + 16:orow + 17, 0:8 * L]
    b4row = jc_ref[orow + 24:orow + 25, 0:L]

    bmapT = bmapT_ref[...]

    # Static unroll over the Bt batch elements of this grid step.
    for bi in range(bt):
        # ====== node branch: features on sublanes, nodes on lanes ======
        dagT = dagT_ref[bi]                                    # (F, J)
        u = jnp.dot(nw1dg, dagT, preferred_element_type=f32)   # (32, J)
        h = (jnp.dot(nw1ng, ngT_ref[bi], preferred_element_type=f32)
             + jnp.dot(u, bmapT, preferred_element_type=f32)           # re-assoc bmm
             + jnp.dot(nw1gl, globT_ref[bi], preferred_element_type=f32)  # (32,1) bcast
             + nb1)
        h = _leaky(h)
        h = _leaky(jnp.dot(nw2, h, preferred_element_type=f32) + nb2)
        h = _leaky(jnp.dot(nw3, h, preferred_element_type=f32) + nb3)
        nlg = jnp.dot(nw4, h, preferred_element_type=f32) + nb4        # (1, N)

        x = nlg + (nmask_ref[bi] - 1.0) * 10000.0
        m = jnp.max(x, axis=-1, keepdims=True)
        e = jnp.exp(x - m)
        node_out_ref[bi] = e / jnp.sum(e, axis=-1, keepdims=True)      # exact norm

        # ====== job branch: all L levels in ONE chain (block-diag weights) ======
        base = (jnp.dot(job_ref[bi], jw1a, preferred_element_type=f32)
                + jnp.dot(dag_ref[bi], jw1b, preferred_element_type=f32)
                + jnp.dot(glob_ref[bi], jw1c, preferred_element_type=f32)  # (1,32) bcast
                + jb1)                                                  # (J, 32)
        h1 = _leaky(jnp.dot(base, t1, preferred_element_type=f32) + levrow)   # (J, 32L)
        h2 = _leaky(jnp.dot(h1, w2bd, preferred_element_type=f32) + b2row)    # (J, 16L)
        h3 = _leaky(jnp.dot(h2, w3bd, preferred_element_type=f32) + b3row)    # (J, 8L)
        jlg = jnp.dot(h3, w4bd, preferred_element_type=f32) + b4row           # (J, L)

        xj = jlg + (jmask_ref[bi] - 1.0) * 10000.0
        mj = jnp.max(xj, axis=-1, keepdims=True)
        ej = jnp.exp(xj - mj)
        job_out_ref[bi] = ej / jnp.sum(ej, axis=-1, keepdims=True)     # exact norm


# ------------------------------------------------------------------
# Forward pass wrapper
# ------------------------------------------------------------------

def actor_forward(params, node_inputs, gcn_outputs, job_inputs, gsn_dag_summary,
                  gsn_global_summary, node_valid_mask, job_valid_mask,
                  gsn_summ_backward_map, node_input_dim, job_input_dim, output_dim,
                  executor_levels, *, batch_block=8):
    f32 = jnp.float32
    B = node_valid_mask.shape[0]
    Fn, Fj, F = node_input_dim, job_input_dim, output_dim

    node_inputs = node_inputs.reshape(B, -1, Fn).astype(f32)
    job_inputs = job_inputs.reshape(B, -1, Fj).astype(f32)
    gcn_outputs = gcn_outputs.reshape(B, -1, F).astype(f32)
    dag = gsn_dag_summary.reshape(B, -1, F).astype(f32)
    glob = gsn_global_summary.reshape(B, 1, F).astype(f32)
    bmap = gsn_summ_backward_map.astype(f32)                    # (N, J)

    N = node_inputs.shape[1]
    J = dag.shape[1]
    levels = np.asarray([l / 50.0 for l in executor_levels], np.float32)
    L = int(levels.shape[0])

    # Batch blocking: Bt elements per grid step (on v7x pick batch_block <= B/2
    # so both TensorCores get work).
    bt = _largest_divisor_leq(B, max(1, batch_block))
    grid = (B // bt,)

    # ---- layout plumbing (feature-major for the node branch) ----
    ngT = jnp.transpose(jnp.concatenate([node_inputs, gcn_outputs], axis=2), (0, 2, 1))
    dagT = jnp.transpose(dag, (0, 2, 1))                        # (B, F, J)
    globT = jnp.transpose(glob, (0, 2, 1))                      # (B, F, 1)
    bmapT = jnp.transpose(bmap)                                 # (J, N)
    nmask = node_valid_mask.astype(f32).reshape(B, 1, N)
    jmask = job_valid_mask.astype(f32).reshape(B, J, L)

    # ---- pack parameters into a few slabs ----
    (nw1, nbv1), (nw2, nbv2), (nw3, nbv3), (nw4, nbv4) = params["fc_node"]
    (jw1, jbv1), (jw2, jbv2), (jw3, jbv3), (jw4, jbv4) = params["fc_job"]

    # node slab: transposed weights, row-stacked at 8-aligned offsets
    nw_cols = max(32, Fn + F)
    nw_slab = jnp.zeros((128, nw_cols), f32)
    nw_slab = nw_slab.at[0:32, 0:Fn + F].set(nw1[0:Fn + F].T)
    nw_slab = nw_slab.at[32:64, 0:F].set(nw1[Fn + F:Fn + 2 * F].T)
    nw_slab = nw_slab.at[64:96, 0:F].set(nw1[Fn + 2 * F:Fn + 3 * F].T)
    nw_slab = nw_slab.at[96:112, 0:32].set(nw2.T)
    nw_slab = nw_slab.at[112:120, 0:16].set(nw3.T)
    nw_slab = nw_slab.at[120:121, 0:8].set(nw4.T)

    nb_slab = jnp.zeros((32, 4), f32)
    nb_slab = nb_slab.at[0:32, 0].set(nbv1.reshape(32))
    nb_slab = nb_slab.at[0:16, 1].set(nbv2.reshape(16))
    nb_slab = nb_slab.at[0:8, 2].set(nbv3.reshape(8))
    nb_slab = nb_slab.at[0:1, 3].set(nbv4.reshape(1))

    # job layer-1 slab (row-major)
    ob = _ru8(Fj)
    oc = ob + _ru8(F)
    od = oc + _ru8(F)
    jb_rows = _ru8(od + 1)
    jb_slab = jnp.zeros((jb_rows, 32), f32)
    jb_slab = jb_slab.at[0:Fj, :].set(jw1[0:Fj])
    jb_slab = jb_slab.at[ob:ob + F, :].set(jw1[Fj:Fj + F])
    jb_slab = jb_slab.at[oc:oc + F, :].set(jw1[Fj + F:Fj + 2 * F])
    jb_slab = jb_slab.at[od:od + 1, :].set(jbv1.reshape(1, 32))

    # job chain slab: level-block-diagonal weights so one matmul handles all levels
    w1lev = jw1[Fj + 2 * F:Fj + 2 * F + 1]                      # (1, 32) level row of W1
    eyeL = jnp.eye(L, dtype=f32)
    t1 = jnp.tile(jnp.eye(32, dtype=f32), (1, L))               # (32, 32L)
    w2bd = jnp.kron(eyeL, jw2)                                  # (32L, 16L)
    w3bd = jnp.kron(eyeL, jw3)                                  # (16L, 8L)
    w4bd = jnp.kron(eyeL, jw4)                                  # (8L, L)
    levrow = jnp.kron(jnp.asarray(levels).reshape(1, L), w1lev)  # (1, 32L)
    b2row = jnp.tile(jbv2.reshape(1, 16), (1, L))
    b3row = jnp.tile(jbv3.reshape(1, 8), (1, L))
    b4row = jnp.tile(jbv4.reshape(1, 1), (1, L))
    o2 = 32
    o3 = o2 + 32 * L
    o4 = o3 + 16 * L
    orow = o4 + 8 * L
    jc_rows = orow + 32
    jc_slab = jnp.zeros((jc_rows, 32 * L), f32)
    jc_slab = jc_slab.at[0:32, :].set(t1)
    jc_slab = jc_slab.at[o2:o3, 0:16 * L].set(w2bd)
    jc_slab = jc_slab.at[o3:o4, 0:8 * L].set(w3bd)
    jc_slab = jc_slab.at[o4:orow, 0:L].set(w4bd)
    jc_slab = jc_slab.at[orow:orow + 1, :].set(levrow)
    jc_slab = jc_slab.at[orow + 8:orow + 9, 0:16 * L].set(b2row)
    jc_slab = jc_slab.at[orow + 16:orow + 17, 0:8 * L].set(b3row)
    jc_slab = jc_slab.at[orow + 24:orow + 25, 0:L].set(b4row)

    batched = [ngT, dagT, globT, job_inputs, dag, glob, nmask, jmask]
    shared = [bmapT, nw_slab, nb_slab, jb_slab, jc_slab]

    def batched_spec(arr):
        d1, d2 = arr.shape[1], arr.shape[2]
        return pl.BlockSpec((bt, d1, d2), lambda g: (g, 0, 0))

    def shared_spec(arr):
        r, c = arr.shape
        return pl.BlockSpec((r, c), lambda g: (0, 0))

    in_specs = [batched_spec(a) for a in batched] + [shared_spec(a) for a in shared]

    out_shape = (jax.ShapeDtypeStruct((B, 1, N), f32),
                 jax.ShapeDtypeStruct((B, J, L), f32))
    out_specs = (pl.BlockSpec((bt, 1, N), lambda g: (g, 0, 0)),
                 pl.BlockSpec((bt, J, L), lambda g: (g, 0, 0)))

    kernel = functools.partial(_actor_fused_kernel, fn=Fn, fj=Fj, f=F, nlev=L, bt=bt)
    node_out3, job_out = pl.pallas_call(
        kernel,
        out_shape=out_shape,
        grid=grid,
        in_specs=in_specs,
        out_specs=out_specs,
        compiler_params=pltpu.CompilerParams(
            dimension_semantics=("parallel",),
        ),
    )(*batched, *shared)

    return node_out3.reshape(B, N), job_out


# ------------------------------------------------------------------
# Pure-JAX reference (mirrors the PyTorch forward exactly)
# ------------------------------------------------------------------

def _mlp_ref(x, layers):
    h = x
    for i, (w, b) in enumerate(layers):
        h = jnp.dot(h, w, precision=jax.lax.Precision.HIGHEST) + b
        if i < len(layers) - 1:
            h = _leaky(h)
    return h


def actor_forward_ref(params, node_inputs, gcn_outputs, job_inputs, gsn_dag_summary,
                      gsn_global_summary, node_valid_mask, job_valid_mask,
                      gsn_summ_backward_map, node_input_dim, job_input_dim, output_dim,
                      executor_levels):
    B = node_valid_mask.shape[0]
    node_inputs = node_inputs.reshape(B, -1, node_input_dim)
    job_inputs = job_inputs.reshape(B, -1, job_input_dim)
    gcn_outputs = gcn_outputs.reshape(B, -1, output_dim)
    dag_summ = gsn_dag_summary.reshape(B, -1, output_dim)
    dag_ext = jnp.einsum("nj,bjf->bnf", gsn_summ_backward_map, dag_summ,
                         precision=jax.lax.Precision.HIGHEST)
    glob = gsn_global_summary.reshape(B, 1, output_dim)
    N = dag_ext.shape[1]
    J = dag_summ.shape[1]

    merge_node = jnp.concatenate(
        [node_inputs, gcn_outputs, dag_ext, jnp.tile(glob, (1, N, 1))], axis=2)
    node_logits = _mlp_ref(merge_node.reshape(B * N, -1),
                           params["fc_node"]).reshape(B, N)
    node_out = jax.nn.softmax(
        node_logits + (node_valid_mask.astype(jnp.float32) - 1.0) * 10000.0, axis=-1)

    merge_job = jnp.concatenate(
        [job_inputs, dag_summ, jnp.tile(glob, (1, J, 1))], axis=2)
    L = len(executor_levels)
    levels = jnp.asarray([l / 50.0 for l in executor_levels], jnp.float32)
    # expand_act_on_state: job-major, level-minor ordering
    exp_state = jnp.concatenate(
        [jnp.repeat(merge_job, L, axis=1),
         jnp.tile(levels.reshape(1, L, 1), (B, J, 1))], axis=2)
    job_logits = _mlp_ref(exp_state.reshape(B * J * L, -1),
                          params["fc_job"]).reshape(B, J, L)
    job_out = jax.nn.softmax(
        job_logits + (job_valid_mask.astype(jnp.float32).reshape(B, J, L) - 1.0) * 10000.0,
        axis=-1)
    return node_out, job_out


# ------------------------------------------------------------------
# Parameter init (deterministic, PyTorch-Linear-style uniform)
# ------------------------------------------------------------------

def init_linear(key, din, dout):
    kw, kb = jax.random.split(key)
    lim = 1.0 / np.sqrt(din)
    w = jax.random.uniform(kw, (din, dout), jnp.float32, -lim, lim)
    b = jax.random.uniform(kb, (1, dout), jnp.float32, -lim, lim)
    return w, b


def init_mlp(key, dims):
    keys = jax.random.split(key, len(dims) - 1)
    return [init_linear(k, dims[i], dims[i + 1]) for i, k in enumerate(keys)]


if __name__ == "__main__":
    node_input_dim = 5
    job_input_dim = 3
    output_dim = 8
    executor_levels = range(1, 9)   # L = 8
    L = len(executor_levels)
    B, N, J = 4, 16, 4

    key = jax.random.PRNGKey(0)
    ks = jax.random.split(key, 10)

    node_inputs = jax.random.normal(ks[0], (B, N, node_input_dim), jnp.float32)
    gcn_outputs = jax.random.normal(ks[1], (B, N, output_dim), jnp.float32)
    job_inputs = jax.random.normal(ks[2], (B, J, job_input_dim), jnp.float32)
    gsn_dag_summary = jax.random.normal(ks[3], (B, J, output_dim), jnp.float32)
    gsn_global_summary = jax.random.normal(ks[4], (B, 1, output_dim), jnp.float32)
    node_valid_mask = (jax.random.uniform(ks[5], (B, N)) > 0.3).astype(jnp.float32)
    job_valid_mask = (jax.random.uniform(ks[6], (B, J * L)) > 0.3).astype(jnp.float32)
    # one-hot node -> job backward map (N, J)
    gsn_summ_backward_map = jax.nn.one_hot(jnp.arange(N) % J, J, dtype=jnp.float32)

    reshape_node_dim = node_input_dim + 3 * output_dim
    expand_state_dim = job_input_dim + 2 * output_dim + 1
    params = {
        "fc_node": init_mlp(ks[7], [reshape_node_dim, 32, 16, 8, 1]),
        "fc_job": init_mlp(ks[8], [expand_state_dim, 32, 16, 8, 1]),
    }

    # Fused Pallas forward (Bt=2 per grid step -> grid=(2,) here: exercises both
    # batch blocking and a multi-step parallel grid).
    node_out, job_out = actor_forward(
        params, node_inputs, gcn_outputs, job_inputs, gsn_dag_summary,
        gsn_global_summary, node_valid_mask, job_valid_mask,
        gsn_summ_backward_map, node_input_dim, job_input_dim, output_dim,
        executor_levels, batch_block=2)
    node_out = jax.block_until_ready(node_out)
    job_out = jax.block_until_ready(job_out)

    # Pure-JAX reference
    node_ref, job_ref = actor_forward_ref(
        params, node_inputs, gcn_outputs, job_inputs, gsn_dag_summary,
        gsn_global_summary, node_valid_mask, job_valid_mask,
        gsn_summ_backward_map, node_input_dim, job_input_dim, output_dim,
        executor_levels)

    assert node_out.shape == (B, N)
    assert job_out.shape == (B, J, L)
    # Softmax normalization is now exact (no approx reciprocal); the tolerance only
    # hedges XLA-vs-Mosaic f32 matmul precision-class differences.
    np.testing.assert_allclose(np.asarray(node_out), np.asarray(node_ref),
                               rtol=2e-3, atol=1e-4)
    np.testing.assert_allclose(np.asarray(job_out), np.asarray(job_ref),
                               rtol=2e-3, atol=1e-4)

    print("KERNEL_OK")
</pallas_src>

<mosaic_0001>
module attributes {stable_mosaic.version = 11 : i64} {
  func.func @_actor_fused_kernel(%arg0: i32, %arg1: memref<2x13x16xf32, #tpu.memory_space<vmem>>, %arg2: memref<2x8x4xf32, #tpu.memory_space<vmem>>, %arg3: memref<2x8x1xf32, #tpu.memory_space<vmem>>, %arg4: memref<2x4x3xf32, #tpu.memory_space<vmem>>, %arg5: memref<2x4x8xf32, #tpu.memory_space<vmem>>, %arg6: memref<2x1x8xf32, #tpu.memory_space<vmem>>, %arg7: memref<2x1x16xf32, #tpu.memory_space<vmem>>, %arg8: memref<2x4x8xf32, #tpu.memory_space<vmem>>, %arg9: memref<4x16xf32, #tpu.memory_space<vmem>>, %arg10: memref<128x32xf32, #tpu.memory_space<vmem>>, %arg11: memref<32x4xf32, #tpu.memory_space<vmem>>, %arg12: memref<32x32xf32, #tpu.memory_space<vmem>>, %arg13: memref<512x256xf32, #tpu.memory_space<vmem>>, %arg14: memref<2x1x16xf32, #tpu.memory_space<vmem>>, %arg15: memref<2x4x8xf32, #tpu.memory_space<vmem>>) attributes {dimension_semantics = [#tpu.dimension_semantics<parallel>], iteration_bounds = array<i64: 2>, scalar_prefetch = 0 : i64, scratch_operands = 0 : i64, tpu.core_type = #tpu.core_type<tc>, window_params = [{transform_indices = @transform_0, window_bounds = array<i64: 2, 13, 16>}, {transform_indices = @transform_1, window_bounds = array<i64: 2, 8, 4>}, {transform_indices = @transform_2, window_bounds = array<i64: 2, 8, 1>}, {transform_indices = @transform_3, window_bounds = array<i64: 2, 4, 3>}, {transform_indices = @transform_4, window_bounds = array<i64: 2, 4, 8>}, {transform_indices = @transform_5, window_bounds = array<i64: 2, 1, 8>}, {transform_indices = @transform_6, window_bounds = array<i64: 2, 1, 16>}, {transform_indices = @transform_7, window_bounds = array<i64: 2, 4, 8>}, {pipeline_mode = #tpu.pipeline_mode<synchronous>, transform_indices = @transform_8, window_bounds = array<i64: 4, 16>}, {pipeline_mode = #tpu.pipeline_mode<synchronous>, transform_indices = @transform_9, window_bounds = array<i64: 128, 32>}, {pipeline_mode = #tpu.pipeline_mode<synchronous>, transform_indices = @transform_10, window_bounds = array<i64: 32, 4>}, {pipeline_mode = #tpu.pipeline_mode<synchronous>, transform_indices = @transform_11, window_bounds = array<i64: 32, 32>}, {pipeline_mode = #tpu.pipeline_mode<synchronous>, transform_indices = @transform_12, window_bounds = array<i64: 512, 256>}, {transform_indices = @transform_13, window_bounds = array<i64: 2, 1, 16>}, {transform_indices = @transform_14, window_bounds = array<i64: 2, 4, 8>}]} {
    %c0 = arith.constant 0 : index
    %c0_0 = arith.constant 0 : index
    %0 = vector.load %arg10[%c0, %c0_0] : memref<128x32xf32, #tpu.memory_space<vmem>>, vector<32x13xf32>
    %c32 = arith.constant 32 : index
    %c0_1 = arith.constant 0 : index
    %1 = vector.load %arg10[%c32, %c0_1] : memref<128x32xf32, #tpu.memory_space<vmem>>, vector<32x8xf32>
    %c64 = arith.constant 64 : index
    %c0_2 = arith.constant 0 : index
    %2 = vector.load %arg10[%c64, %c0_2] : memref<128x32xf32, #tpu.memory_space<vmem>>, vector<32x8xf32>
    %c96 = arith.constant 96 : index
    %c0_3 = arith.constant 0 : index
    %3 = vector.load %arg10[%c96, %c0_3] : memref<128x32xf32, #tpu.memory_space<vmem>>, vector<16x32xf32>
    %c112 = arith.constant 112 : index
    %c0_4 = arith.constant 0 : index
    %4 = vector.load %arg10[%c112, %c0_4] : memref<128x32xf32, #tpu.memory_space<vmem>>, vector<8x16xf32>
    %c120 = arith.constant 120 : index
    %c0_5 = arith.constant 0 : index
    %5 = vector.load %arg10[%c120, %c0_5] : memref<128x32xf32, #tpu.memory_space<vmem>>, vector<1x8xf32>
    %c0_6 = arith.constant 0 : index
    %c0_7 = arith.constant 0 : index
    %6 = vector.load %arg11[%c0_6, %c0_7] : memref<32x4xf32, #tpu.memory_space<vmem>>, vector<32x1xf32>
    %c0_8 = arith.constant 0 : index
    %c1 = arith.constant 1 : index
    %7 = vector.load %arg11[%c0_8, %c1] : memref<32x4xf32, #tpu.memory_space<vmem>>, vector<16x1xf32>
    %c0_9 = arith.constant 0 : index
    %c2 = arith.constant 2 : index
    %8 = vector.load %arg11[%c0_9, %c2] : memref<32x4xf32, #tpu.memory_space<vmem>>, vector<8x1xf32>
    %c0_10 = arith.constant 0 : index
    %c3 = arith.constant 3 : index
    %9 = vector.load %arg11[%c0_10, %c3] : memref<32x4xf32, #tpu.memory_space<vmem>>, vector<1x1xf32>
    %c0_11 = arith.constant 0 : index
    %c0_12 = arith.constant 0 : index
    %10 = vector.load %arg12[%c0_11, %c0_12] : memref<32x32xf32, #tpu.memory_space<vmem>>, vector<3x32xf32>
    %c8 = arith.constant 8 : index
    %c0_13 = arith.constant 0 : index
    %11 = vector.load %arg12[%c8, %c0_13] : memref<32x32xf32, #tpu.memory_space<vmem>>, vector<8x32xf32>
    %c16 = arith.constant 16 : index
    %c0_14 = arith.constant 0 : index
    %12 = vector.load %arg12[%c16, %c0_14] : memref<32x32xf32, #tpu.memory_space<vmem>>, vector<8x32xf32>
    %c24 = arith.constant 24 : index
    %c0_15 = arith.constant 0 : index
    %13 = vector.load %arg12[%c24, %c0_15] : memref<32x32xf32, #tpu.memory_space<vmem>>, vector<1x32xf32>
    %c0_16 = arith.constant 0 : index
    %c0_17 = arith.constant 0 : index
    %14 = vector.load %arg13[%c0_16, %c0_17] : memref<512x256xf32, #tpu.memory_space<vmem>>, vector<32x256xf32>
    %c32_18 = arith.constant 32 : index
    %c0_19 = arith.constant 0 : index
    %15 = vector.load %arg13[%c32_18, %c0_19] : memref<512x256xf32, #tpu.memory_space<vmem>>, vector<256x128xf32>
    %c288 = arith.constant 288 : index
    %c0_20 = arith.constant 0 : index
    %16 = vector.load %arg13[%c288, %c0_20] : memref<512x256xf32, #tpu.memory_space<vmem>>, vector<128x64xf32>
    %c416 = arith.constant 416 : index
    %c0_21 = arith.constant 0 : index
    %17 = vector.load %arg13[%c416, %c0_21] : memref<512x256xf32, #tpu.memory_space<vmem>>, vector<64x8xf32>
    %c480 = arith.constant 480 : index
    %c0_22 = arith.constant 0 : index
    %18 = vector.load %arg13[%c480, %c0_22] : memref<512x256xf32, #tpu.memory_space<vmem>>, vector<1x256xf32>
    %c488 = arith.constant 488 : index
    %c0_23 = arith.constant 0 : index
    %19 = vector.load %arg13[%c488, %c0_23] : memref<512x256xf32, #tpu.memory_space<vmem>>, vector<1x128xf32>
    %c496 = arith.constant 496 : index
    %c0_24 = arith.constant 0 : index
    %20 = vector.load %arg13[%c496, %c0_24] : memref<512x256xf32, #tpu.memory_space<vmem>>, vector<1x64xf32>
    %c504 = arith.constant 504 : index
    %c0_25 = arith.constant 0 : index
    %21 = vector.load %arg13[%c504, %c0_25] : memref<512x256xf32, #tpu.memory_space<vmem>>, vector<1x8xf32>
    %c0_26 = arith.constant 0 : index
    %c0_27 = arith.constant 0 : index
    %22 = vector.load %arg9[%c0_26, %c0_27] : memref<4x16xf32, #tpu.memory_space<vmem>>, vector<4x16xf32>
    %c0_28 = arith.constant 0 : index
    %c0_29 = arith.constant 0 : index
    %c0_30 = arith.constant 0 : index
    %23 = vector.load %arg2[%c0_28, %c0_29, %c0_30] : memref<2x8x4xf32, #tpu.memory_space<vmem>>, vector<1x8x4xf32>
    %24 = vector.shape_cast %23 : vector<1x8x4xf32> to vector<8x4xf32>
    %cst = arith.constant dense<0.000000e+00> : vector<32x4xf32>
    %25 = tpu.matmul %1, %24, %cst {dimension_numbers = #tpu.dot_dimension_numbers<[1], [0], [0], [1], [0, 0, 1, 1], [], []>} : vector<32x8xf32>, vector<8x4xf32>, vector<32x4xf32> -> vector<32x4xf32>
    %c0_31 = arith.constant 0 : index
    %c0_32 = arith.constant 0 : index
    %c0_33 = arith.constant 0 : index
    %26 = vector.load %arg1[%c0_31, %c0_32, %c0_33] : memref<2x13x16xf32, #tpu.memory_space<vmem>>, vector<1x13x16xf32>
    %27 = vector.shape_cast %26 : vector<1x13x16xf32> to vector<13x16xf32>
    %cst_34 = arith.constant dense<0.000000e+00> : vector<32x16xf32>
    %28 = tpu.matmul %0, %27, %cst_34 {dimension_numbers = #tpu.dot_dimension_numbers<[1], [0], [0], [1], [0, 0, 1, 1], [], []>} : vector<32x13xf32>, vector<13x16xf32>, vector<32x16xf32> -> vector<32x16xf32>
    %cst_35 = arith.constant dense<0.000000e+00> : vector<32x16xf32>
    %29 = tpu.matmul %25, %22, %cst_35 {dimension_numbers = #tpu.dot_dimension_numbers<[1], [0], [0], [1], [0, 0, 1, 1], [], []>} : vector<32x4xf32>, vector<4x16xf32>, vector<32x16xf32> -> vector<32x16xf32>
    %30 = arith.addf %28, %29 : vector<32x16xf32>
    %c0_36 = arith.constant 0 : index
    %c0_37 = arith.constant 0 : index
    %c0_38 = arith.constant 0 : index
    %31 = vector.load %arg3[%c0_36, %c0_37, %c0_38] : memref<2x8x1xf32, #tpu.memory_space<vmem>>, vector<1x8x1xf32>
    %32 = vector.shape_cast %31 : vector<1x8x1xf32> to vector<8x1xf32>
    %cst_39 = arith.constant dense<0.000000e+00> : vector<32x1xf32>
    %33 = tpu.matmul %2, %32, %cst_39 {dimension_numbers = #tpu.dot_dimension_numbers<[1], [0], [0], [1], [0, 0, 1, 1], [], []>} : vector<32x8xf32>, vector<8x1xf32>, vector<32x1xf32> -> vector<32x1xf32>
    %34 = vector.broadcast %33 : vector<32x1xf32> to vector<32x16xf32>
    %35 = arith.addf %30, %34 : vector<32x16xf32>
    %36 = vector.broadcast %6 : vector<32x1xf32> to vector<32x16xf32>
    %37 = arith.addf %35, %36 : vector<32x16xf32>
    %cst_40 = arith.constant 0.000000e+00 : f32
    %38 = vector.broadcast %cst_40 : f32 to vector<32x16xf32>
    %39 = arith.cmpf oge, %37, %38 : vector<32x16xf32>
    %cst_41 = arith.constant 0.00999999977 : f32
    %40 = vector.broadcast %cst_41 : f32 to vector<32x16xf32>
    %41 = arith.mulf %40, %37 : vector<32x16xf32>
    %42 = arith.select %39, %37, %41 : vector<32x16xi1>, vector<32x16xf32>
    %cst_42 = arith.constant dense<0.000000e+00> : vector<16x16xf32>
    %43 = tpu.matmul %3, %42, %cst_42 {dimension_numbers = #tpu.dot_dimension_numbers<[1], [0], [0], [1], [0, 0, 1, 1], [], []>} : vector<16x32xf32>, vector<32x16xf32>, vector<16x16xf32> -> vector<16x16xf32>
    %44 = vector.broadcast %7 : vector<16x1xf32> to vector<16x16xf32>
    %45 = arith.addf %43, %44 : vector<16x16xf32>
    %cst_43 = arith.constant 0.000000e+00 : f32
    %46 = vector.broadcast %cst_43 : f32 to vector<16x16xf32>
    %47 = arith.cmpf oge, %45, %46 : vector<16x16xf32>
    %cst_44 = arith.constant 0.00999999977 : f32
    %48 = vector.broadcast %cst_44 : f32 to vector<16x16xf32>
    %49 = arith.mulf %48, %45 : vector<16x16xf32>
    %50 = arith.select %47, %45, %49 : vector<16x16xi1>, vector<16x16xf32>
    %cst_45 = arith.constant dense<0.000000e+00> : vector<8x16xf32>
    %51 = tpu.matmul %4, %50, %cst_45 {dimension_numbers = #tpu.dot_dimension_numbers<[1], [0], [0], [1], [0, 0, 1, 1], [], []>} : vector<8x16xf32>, vector<16x16xf32>, vector<8x16xf32> -> vector<8x16xf32>
    %52 = vector.broadcast %8 : vector<8x1xf32> to vector<8x16xf32>
    %53 = arith.addf %51, %52 : vector<8x16xf32>
    %cst_46 = arith.constant 0.000000e+00 : f32
    %54 = vector.broadcast %cst_46 : f32 to vector<8x16xf32>
    %55 = arith.cmpf oge, %53, %54 : vector<8x16xf32>
    %cst_47 = arith.constant 0.00999999977 : f32
    %56 = vector.broadcast %cst_47 : f32 to vector<8x16xf32>
    %57 = arith.mulf %56, %53 : vector<8x16xf32>
    %58 = arith.select %55, %53, %57 : vector<8x16xi1>, vector<8x16xf32>
    %cst_48 = arith.constant dense<0.000000e+00> : vector<1x16xf32>
    %59 = tpu.matmul %5, %58, %cst_48 {dimension_numbers = #tpu.dot_dimension_numbers<[1], [0], [0], [1], [0, 0, 1, 1], [], []>} : vector<1x8xf32>, vector<8x16xf32>, vector<1x16xf32> -> vector<1x16xf32>
    %60 = vector.broadcast %9 : vector<1x1xf32> to vector<1x16xf32>
    %61 = arith.addf %59, %60 : vector<1x16xf32>
    %c0_49 = arith.constant 0 : index
    %c0_50 = arith.constant 0 : index
    %c0_51 = arith.constant 0 : index
    %62 = vector.load %arg7[%c0_49, %c0_50, %c0_51] : memref<2x1x16xf32, #tpu.memory_space<vmem>>, vector<1x1x16xf32>
    %63 = vector.shape_cast %62 : vector<1x1x16xf32> to vector<1x16xf32>
    %cst_52 = arith.constant 1.000000e+00 : f32
    %64 = vector.broadcast %cst_52 : f32 to vector<1x16xf32>
    %65 = arith.subf %63, %64 : vector<1x16xf32>
    %cst_53 = arith.constant 1.000000e+04 : f32
    %66 = vector.broadcast %cst_53 : f32 to vector<1x16xf32>
    %67 = arith.mulf %65, %66 : vector<1x16xf32>
    %68 = arith.addf %61, %67 : vector<1x16xf32>
    %cst_54 = arith.constant dense<0xFF800000> : vector<1xf32>
    %69 = vector.multi_reduction <maximumf>, %68, %cst_54 [1] : vector<1x16xf32> to vector<1xf32>
    %70 = vector.shape_cast %69 : vector<1xf32> to vector<1x1xf32>
    %71 = vector.broadcast %70 : vector<1x1xf32> to vector<1x16xf32>
    %72 = arith.subf %68, %71 : vector<1x16xf32>
    %73 = math.exp %72 : vector<1x16xf32>
    %cst_55 = arith.constant dense<0.000000e+00> : vector<1xf32>
    %74 = vector.multi_reduction <add>, %73, %cst_55 [1] : vector<1x16xf32> to vector<1xf32>
    %75 = vector.shape_cast %74 : vector<1xf32> to vector<1x1xf32>
    %76 = vector.broadcast %75 : vector<1x1xf32> to vector<1x16xf32>
    %77 = arith.divf %73, %76 : vector<1x16xf32>
    %c0_56 = arith.constant 0 : index
    %c0_57 = arith.constant 0 : index
    %c0_58 = arith.constant 0 : index
    %78 = vector.load %arg14[%c0_56, %c0_57, %c0_58] : memref<2x1x16xf32, #tpu.memory_space<vmem>>, vector<1x1x16xf32>
    %79 = vector.shape_cast %78 : vector<1x1x16xf32> to vector<1x16xf32>
    %80 = vector.shape_cast %77 : vector<1x16xf32> to vector<1x1x16xf32>
    tpu.vector_store %arg14[%c0_56, %c0_57, %c0_58], %80 {strides = array<i32>} : memref<2x1x16xf32, #tpu.memory_space<vmem>>, vector<1x1x16xf32>,
    %c0_59 = arith.constant 0 : index
    %c0_60 = arith.constant 0 : index
    %c0_61 = arith.constant 0 : index
    %81 = vector.load %arg4[%c0_59, %c0_60, %c0_61] : memref<2x4x3xf32, #tpu.memory_space<vmem>>, vector<1x4x3xf32>
    %82 = vector.shape_cast %81 : vector<1x4x3xf32> to vector<4x3xf32>
    %cst_62 = arith.constant dense<0.000000e+00> : vector<4x32xf32>
    %83 = tpu.matmul %82, %10, %cst_62 {dimension_numbers = #tpu.dot_dimension_numbers<[1], [0], [0], [1], [0, 0, 1, 1], [], []>} : vector<4x3xf32>, vector<3x32xf32>, vector<4x32xf32> -> vector<4x32xf32>
    %c0_63 = arith.constant 0 : index
    %c0_64 = arith.constant 0 : index
    %c0_65 = arith.constant 0 : index
    %84 = vector.load %arg5[%c0_63, %c0_64, %c0_65] : memref<2x4x8xf32, #tpu.memory_space<vmem>>, vector<1x4x8xf32>
    %85 = vector.shape_cast %84 : vector<1x4x8xf32> to vector<4x8xf32>
    %cst_66 = arith.constant dense<0.000000e+00> : vector<4x32xf32>
    %86 = tpu.matmul %85, %11, %cst_66 {dimension_numbers = #tpu.dot_dimension_numbers<[1], [0], [0], [1], [0, 0, 1, 1], [], []>} : vector<4x8xf32>, vector<8x32xf32>, vector<4x32xf32> -> vector<4x32xf32>
    %87 = arith.addf %83, %86 : vector<4x32xf32>
    %c0_67 = arith.constant 0 : index
    %c0_68 = arith.constant 0 : index
    %c0_69 = arith.constant 0 : index
    %88 = vector.load %arg6[%c0_67, %c0_68, %c0_69] : memref<2x1x8xf32, #tpu.memory_space<vmem>>, vector<1x1x8xf32>
    %89 = vector.shape_cast %88 : vector<1x1x8xf32> to vector<1x8xf32>
    %cst_70 = arith.constant dense<0.000000e+00> : vector<1x32xf32>
    %90 = tpu.matmul %89, %12, %cst_70 {dimension_numbers = #tpu.dot_dimension_numbers<[1], [0], [0], [1], [0, 0, 1, 1], [], []>} : vector<1x8xf32>, vector<8x32xf32>, vector<1x32xf32> -> vector<1x32xf32>
    %91 = vector.broadcast %90 : vector<1x32xf32> to vector<4x32xf32>
    %92 = arith.addf %87, %91 : vector<4x32xf32>
    %93 = vector.broadcast %13 : vector<1x32xf32> to vector<4x32xf32>
    %94 = arith.addf %92, %93 : vector<4x32xf32>
    %cst_71 = arith.constant dense<0.000000e+00> : vector<4x256xf32>
    %95 = tpu.matmul %94, %14, %cst_71 {dimension_numbers = #tpu.dot_dimension_numbers<[1], [0], [0], [1], [0, 0, 1, 1], [], []>} : vector<4x32xf32>, vector<32x256xf32>, vector<4x256xf32> -> vector<4x256xf32>
    %96 = vector.broadcast %18 : vector<1x256xf32> to vector<4x256xf32>
    %97 = arith.addf %95, %96 : vector<4x256xf32>
    %cst_72 = arith.constant 0.000000e+00 : f32
    %98 = vector.broadcast %cst_72 : f32 to vector<4x256xf32>
    %99 = arith.cmpf oge, %97, %98 : vector<4x256xf32>
    %cst_73 = arith.constant 0.00999999977 : f32
    %100 = vector.broadcast %cst_73 : f32 to vector<4x256xf32>
    %101 = arith.mulf %100, %97 : vector<4x256xf32>
    %102 = arith.select %99, %97, %101 : vector<4x256xi1>, vector<4x256xf32>
    %cst_74 = arith.constant dense<0.000000e+00> : vector<4x128xf32>
    %103 = tpu.matmul %102, %15, %cst_74 {dimension_numbers = #tpu.dot_dimension_numbers<[1], [0], [0], [1], [0, 0, 1, 1], [], []>} : vector<4x256xf32>, vector<256x128xf32>, vector<4x128xf32> -> vector<4x128xf32>
    %104 = vector.broadcast %19 : vector<1x128xf32> to vector<4x128xf32>
    %105 = arith.addf %103, %104 : vector<4x128xf32>
    %cst_75 = arith.constant 0.000000e+00 : f32
    %106 = vector.broadcast %cst_75 : f32 to vector<4x128xf32>
    %107 = arith.cmpf oge, %105, %106 : vector<4x128xf32>
    %cst_76 = arith.constant 0.00999999977 : f32
    %108 = vector.broadcast %cst_76 : f32 to vector<4x128xf32>
    %109 = arith.mulf %108, %105 : vector<4x128xf32>
    %110 = arith.select %107, %105, %109 : vector<4x128xi1>, vector<4x128xf32>
    %cst_77 = arith.constant dense<0.000000e+00> : vector<4x64xf32>
    %111 = tpu.matmul %110, %16, %cst_77 {dimension_numbers = #tpu.dot_dimension_numbers<[1], [0], [0], [1], [0, 0, 1, 1], [], []>} : vector<4x128xf32>, vector<128x64xf32>, vector<4x64xf32> -> vector<4x64xf32>
    %112 = vector.broadcast %20 : vector<1x64xf32> to vector<4x64xf32>
    %113 = arith.addf %111, %112 : vector<4x64xf32>
    %cst_78 = arith.constant 0.000000e+00 : f32
    %114 = vector.broadcast %cst_78 : f32 to vector<4x64xf32>
    %115 = arith.cmpf oge, %113, %114 : vector<4x64xf32>
    %cst_79 = arith.constant 0.00999999977 : f32
    %116 = vector.broadcast %cst_79 : f32 to vector<4x64xf32>
    %117 = arith.mulf %116, %113 : vector<4x64xf32>
    %118 = arith.select %115, %113, %117 : vector<4x64xi1>, vector<4x64xf32>
    %cst_80 = arith.constant dense<0.000000e+00> : vector<4x8xf32>
    %119 = tpu.matmul %118, %17, %cst_80 {dimension_numbers = #tpu.dot_dimension_numbers<[1], [0], [0], [1], [0, 0, 1, 1], [], []>} : vector<4x64xf32>, vector<64x8xf32>, vector<4x8xf32> -> vector<4x8xf32>
    %120 = vector.broadcast %21 : vector<1x8xf32> to vector<4x8xf32>
    %121 = arith.addf %119, %120 : vector<4x8xf32>
    %c0_81 = arith.constant 0 : index
    %c0_82 = arith.constant 0 : index
    %c0_83 = arith.constant 0 : index
    %122 = vector.load %arg8[%c0_81, %c0_82, %c0_83] : memref<2x4x8xf32, #tpu.memory_space<vmem>>, vector<1x4x8xf32>
    %123 = vector.shape_cast %122 : vector<1x4x8xf32> to vector<4x8xf32>
    %cst_84 = arith.constant 1.000000e+00 : f32
    %124 = vector.broadcast %cst_84 : f32 to vector<4x8xf32>
    %125 = arith.subf %123, %124 : vector<4x8xf32>
    %cst_85 = arith.constant 1.000000e+04 : f32
    %126 = vector.broadcast %cst_85 : f32 to vector<4x8xf32>
    %127 = arith.mulf %125, %126 : vector<4x8xf32>
    %128 = arith.addf %121, %127 : vector<4x8xf32>
    %cst_86 = arith.constant dense<0xFF800000> : vector<4xf32>
    %129 = vector.multi_reduction <maximumf>, %128, %cst_86 [1] : vector<4x8xf32> to vector<4xf32>
    %130 = vector.shape_cast %129 : vector<4xf32> to vector<4x1xf32>
    %131 = vector.broadcast %130 : vector<4x1xf32> to vector<4x8xf32>
    %132 = arith.subf %128, %131 : vector<4x8xf32>
    %133 = math.exp %132 : vector<4x8xf32>
    %cst_87 = arith.constant dense<0.000000e+00> : vector<4xf32>
    %134 = vector.multi_reduction <add>, %133, %cst_87 [1] : vector<4x8xf32> to vector<4xf32>
    %135 = vector.shape_cast %134 : vector<4xf32> to vector<4x1xf32>
    %136 = vector.broadcast %135 : vector<4x1xf32> to vector<4x8xf32>
    %137 = arith.divf %133, %136 : vector<4x8xf32>
    %c0_88 = arith.constant 0 : index
    %c0_89 = arith.constant 0 : index
    %c0_90 = arith.constant 0 : index
    %138 = vector.load %arg15[%c0_88, %c0_89, %c0_90] : memref<2x4x8xf32, #tpu.memory_space<vmem>>, vector<1x4x8xf32>
    %139 = vector.shape_cast %138 : vector<1x4x8xf32> to vector<4x8xf32>
    %140 = vector.shape_cast %137 : vector<4x8xf32> to vector<1x4x8xf32>
    tpu.vector_store %arg15[%c0_88, %c0_89, %c0_90], %140 {strides = array<i32>} : memref<2x4x8xf32, #tpu.memory_space<vmem>>, vector<1x4x8xf32>,
    %c1_91 = arith.constant 1 : index
    %c0_92 = arith.constant 0 : index
    %c0_93 = arith.constant 0 : index
    %141 = vector.load %arg2[%c1_91, %c0_92, %c0_93] : memref<2x8x4xf32, #tpu.memory_space<vmem>>, vector<1x8x4xf32>
    %142 = vector.shape_cast %141 : vector<1x8x4xf32> to vector<8x4xf32>
    %cst_94 = arith.constant dense<0.000000e+00> : vector<32x4xf32>
    %143 = tpu.matmul %1, %142, %cst_94 {dimension_numbers = #tpu.dot_dimension_numbers<[1], [0], [0], [1], [0, 0, 1, 1], [], []>} : vector<32x8xf32>, vector<8x4xf32>, vector<32x4xf32> -> vector<32x4xf32>
    %c1_95 = arith.constant 1 : index
    %c0_96 = arith.constant 0 : index
    %c0_97 = arith.constant 0 : index
    %144 = vector.load %arg1[%c1_95, %c0_96, %c0_97] : memref<2x13x16xf32, #tpu.memory_space<vmem>>, vector<1x13x16xf32>
    %145 = vector.shape_cast %144 : vector<1x13x16xf32> to vector<13x16xf32>
    %cst_98 = arith.constant dense<0.000000e+00> : vector<32x16xf32>
    %146 = tpu.matmul %0, %145, %cst_98 {dimension_numbers = #tpu.dot_dimension_numbers<[1], [0], [0], [1], [0, 0, 1, 1], [], []>} : vector<32x13xf32>, vector<13x16xf32>, vector<32x16xf32> -> vector<32x16xf32>
    %cst_99 = arith.constant dense<0.000000e+00> : vector<32x16xf32>
    %147 = tpu.matmul %143, %22, %cst_99 {dimension_numbers = #tpu.dot_dimension_numbers<[1], [0], [0], [1], [0, 0, 1, 1], [], []>} : vector<32x4xf32>, vector<4x16xf32>, vector<32x16xf32> -> vector<32x16xf32>
    %148 = arith.addf %146, %147 : vector<32x16xf32>
    %c1_100 = arith.constant 1 : index
    %c0_101 = arith.constant 0 : index
    %c0_102 = arith.constant 0 : index
    %149 = vector.load %arg3[%c1_100, %c0_101, %c0_102] : memref<2x8x1xf32, #tpu.memory_space<vmem>>, vector<1x8x1xf32>
    %150 = vector.shape_cast %149 : vector<1x8x1xf32> to vector<8x1xf32>
    %cst_103 = arith.constant dense<0.000000e+00> : vector<32x1xf32>
    %151 = tpu.matmul %2, %150, %cst_103 {dimension_numbers = #tpu.dot_dimension_numbers<[1], [0], [0], [1], [0, 0, 1, 1], [], []>} : vector<32x8xf32>, vector<8x1xf32>, vector<32x1xf32> -> vector<32x1xf32>
    %152 = vector.broadcast %151 : vector<32x1xf32> to vector<32x16xf32>
    %153 = arith.addf %148, %152 : vector<32x16xf32>
    %154 = vector.broadcast %6 : vector<32x1xf32> to vector<32x16xf32>
    %155 = arith.addf %153, %154 : vector<32x16xf32>
    %cst_104 = arith.constant 0.000000e+00 : f32
    %156 = vector.broadcast %cst_104 : f32 to vector<32x16xf32>
    %157 = arith.cmpf oge, %155, %156 : vector<32x16xf32>
    %cst_105 = arith.constant 0.00999999977 : f32
    %158 = vector.broadcast %cst_105 : f32 to vector<32x16xf32>
    %159 = arith.mulf %158, %155 : vector<32x16xf32>
    %160 = arith.select %157, %155, %159 : vector<32x16xi1>, vector<32x16xf32>
    %cst_106 = arith.constant dense<0.000000e+00> : vector<16x16xf32>
    %161 = tpu.matmul %3, %160, %cst_106 {dimension_numbers = #tpu.dot_dimension_numbers<[1], [0], [0], [1], [0, 0, 1, 1], [], []>} : vector<16x32xf32>, vector<32x16xf32>, vector<16x16xf32> -> vector<16x16xf32>
    %162 = vector.broadcast %7 : vector<16x1xf32> to vector<16x16xf32>
    %163 = arith.addf %161, %162 : vector<16x16xf32>
    %cst_107 = arith.constant 0.000000e+00 : f32
    %164 = vector.broadcast %cst_107 : f32 to vector<16x16xf32>
    %165 = arith.cmpf oge, %163, %164 : vector<16x16xf32>
    %cst_108 = arith.constant 0.00999999977 : f32
    %166 = vector.broadcast %cst_108 : f32 to vector<16x16xf32>
    %167 = arith.mulf %166, %163 : vector<16x16xf32>
    %168 = arith.select %165, %163, %167 : vector<16x16xi1>, vector<16x16xf32>
    %cst_109 = arith.constant dense<0.000000e+00> : vector<8x16xf32>
    %169 = tpu.matmul %4, %168, %cst_109 {dimension_numbers = #tpu.dot_dimension_numbers<[1], [0], [0], [1], [0, 0, 1, 1], [], []>} : vector<8x16xf32>, vector<16x16xf32>, vector<8x16xf32> -> vector<8x16xf32>
    %170 = vector.broadcast %8 : vector<8x1xf32> to vector<8x16xf32>
    %171 = arith.addf %169, %170 : vector<8x16xf32>
    %cst_110 = arith.constant 0.000000e+00 : f32
    %172 = vector.broadcast %cst_110 : f32 to vector<8x16xf32>
    %173 = arith.cmpf oge, %171, %172 : vector<8x16xf32>
    %cst_111 = arith.constant 0.00999999977 : f32
    %174 = vector.broadcast %cst_111 : f32 to vector<8x16xf32>
    %175 = arith.mulf %174, %171 : vector<8x16xf32>
    %176 = arith.select %173, %171, %175 : vector<8x16xi1>, vector<8x16xf32>
    %cst_112 = arith.constant dense<0.000000e+00> : vector<1x16xf32>
    %177 = tpu.matmul %5, %176, %cst_112 {dimension_numbers = #tpu.dot_dimension_numbers<[1], [0], [0], [1], [0, 0, 1, 1], [], []>} : vector<1x8xf32>, vector<8x16xf32>, vector<1x16xf32> -> vector<1x16xf32>
    %178 = vector.broadcast %9 : vector<1x1xf32> to vector<1x16xf32>
    %179 = arith.addf %177, %178 : vector<1x16xf32>
    %c1_113 = arith.constant 1 : index
    %c0_114 = arith.constant 0 : index
    %c0_115 = arith.constant 0 : index
    %180 = vector.load %arg7[%c1_113, %c0_114, %c0_115] : memref<2x1x16xf32, #tpu.memory_space<vmem>>, vector<1x1x16xf32>
    %181 = vector.shape_cast %180 : vector<1x1x16xf32> to vector<1x16xf32>
    %cst_116 = arith.constant 1.000000e+00 : f32
    %182 = vector.broadcast %cst_116 : f32 to vector<1x16xf32>
    %183 = arith.subf %181, %182 : vector<1x16xf32>
    %cst_117 = arith.constant 1.000000e+04 : f32
    %184 = vector.broadcast %cst_117 : f32 to vector<1x16xf32>
    %185 = arith.mulf %183, %184 : vector<1x16xf32>
    %186 = arith.addf %179, %185 : vector<1x16xf32>
    %cst_118 = arith.constant dense<0xFF800000> : vector<1xf32>
    %187 = vector.multi_reduction <maximumf>, %186, %cst_118 [1] : vector<1x16xf32> to vector<1xf32>
    %188 = vector.shape_cast %187 : vector<1xf32> to vector<1x1xf32>
    %189 = vector.broadcast %188 : vector<1x1xf32> to vector<1x16xf32>
    %190 = arith.subf %186, %189 : vector<1x16xf32>
    %191 = math.exp %190 : vector<1x16xf32>
    %cst_119 = arith.constant dense<0.000000e+00> : vector<1xf32>
    %192 = vector.multi_reduction <add>, %191, %cst_119 [1] : vector<1x16xf32> to vector<1xf32>
    %193 = vector.shape_cast %192 : vector<1xf32> to vector<1x1xf32>
    %194 = vector.broadcast %193 : vector<1x1xf32> to vector<1x16xf32>
    %195 = arith.divf %191, %194 : vector<1x16xf32>
    %c1_120 = arith.constant 1 : index
    %c0_121 = arith.constant 0 : index
    %c0_122 = arith.constant 0 : index
    %196 = vector.load %arg14[%c1_120, %c0_121, %c0_122] : memref<2x1x16xf32, #tpu.memory_space<vmem>>, vector<1x1x16xf32>
    %197 = vector.shape_cast %196 : vector<1x1x16xf32> to vector<1x16xf32>
    %198 = vector.shape_cast %195 : vector<1x16xf32> to vector<1x1x16xf32>
    tpu.vector_store %arg14[%c1_120, %c0_121, %c0_122], %198 {strides = array<i32>} : memref<2x1x16xf32, #tpu.memory_space<vmem>>, vector<1x1x16xf32>,
    %c1_123 = arith.constant 1 : index
    %c0_124 = arith.constant 0 : index
    %c0_125 = arith.constant 0 : index
    %199 = vector.load %arg4[%c1_123, %c0_124, %c0_125] : memref<2x4x3xf32, #tpu.memory_space<vmem>>, vector<1x4x3xf32>
    %200 = vector.shape_cast %199 : vector<1x4x3xf32> to vector<4x3xf32>
    %cst_126 = arith.constant dense<0.000000e+00> : vector<4x32xf32>
    %201 = tpu.matmul %200, %10, %cst_126 {dimension_numbers = #tpu.dot_dimension_numbers<[1], [0], [0], [1], [0, 0, 1, 1], [], []>} : vector<4x3xf32>, vector<3x32xf32>, vector<4x32xf32> -> vector<4x32xf32>
    %c1_127 = arith.constant 1 : index
    %c0_128 = arith.constant 0 : index
    %c0_129 = arith.constant 0 : index
    %202 = vector.load %arg5[%c1_127, %c0_128, %c0_129] : memref<2x4x8xf32, #tpu.memory_space<vmem>>, vector<1x4x8xf32>
    %203 = vector.shape_cast %202 : vector<1x4x8xf32> to vector<4x8xf32>
    %cst_130 = arith.constant dense<0.000000e+00> : vector<4x32xf32>
    %204 = tpu.matmul %203, %11, %cst_130 {dimension_numbers = #tpu.dot_dimension_numbers<[1], [0], [0], [1], [0, 0, 1, 1], [], []>} : vector<4x8xf32>, vector<8x32xf32>, vector<4x32xf32> -> vector<4x32xf32>
    %205 = arith.addf %201, %204 : vector<4x32xf32>
    %c1_131 = arith.constant 1 : index
    %c0_132 = arith.constant 0 : index
    %c0_133 = arith.constant 0 : index
    %206 = vector.load %arg6[%c1_131, %c0_132, %c0_133] : memref<2x1x8xf32, #tpu.memory_space<vmem>>, vector<1x1x8xf32>
    %207 = vector.shape_cast %206 : vector<1x1x8xf32> to vector<1x8xf32>
    %cst_134 = arith.constant dense<0.000000e+00> : vector<1x32xf32>
    %208 = tpu.matmul %207, %12, %cst_134 {dimension_numbers = #tpu.dot_dimension_numbers<[1], [0], [0], [1], [0, 0, 1, 1], [], []>} : vector<1x8xf32>, vector<8x32xf32>, vector<1x32xf32> -> vector<1x32xf32>
    %209 = vector.broadcast %208 : vector<1x32xf32> to vector<4x32xf32>
    %210 = arith.addf %205, %209 : vector<4x32xf32>
    %211 = vector.broadcast %13 : vector<1x32xf32> to vector<4x32xf32>
    %212 = arith.addf %210, %211 : vector<4x32xf32>
    %cst_135 = arith.constant dense<0.000000e+00> : vector<4x256xf32>
    %213 = tpu.matmul %212, %14, %cst_135 {dimension_numbers = #tpu.dot_dimension_numbers<[1], [0], [0], [1], [0, 0, 1, 1], [], []>} : vector<4x32xf32>, vector<32x256xf32>, vector<4x256xf32> -> vector<4x256xf32>
    %214 = vector.broadcast %18 : vector<1x256xf32> to vector<4x256xf32>
    %215 = arith.addf %213, %214 : vector<4x256xf32>
    %cst_136 = arith.constant 0.000000e+00 : f32
    %216 = vector.broadcast %cst_136 : f32 to vector<4x256xf32>
    %217 = arith.cmpf oge, %215, %216 : vector<4x256xf32>
    %cst_137 = arith.constant 0.00999999977 : f32
    %218 = vector.broadcast %cst_137 : f32 to vector<4x256xf32>
    %219 = arith.mulf %218, %215 : vector<4x256xf32>
    %220 = arith.select %217, %215, %219 : vector<4x256xi1>, vector<4x256xf32>
    %cst_138 = arith.constant dense<0.000000e+00> : vector<4x128xf32>
    %221 = tpu.matmul %220, %15, %cst_138 {dimension_numbers = #tpu.dot_dimension_numbers<[1], [0], [0], [1], [0, 0, 1, 1], [], []>} : vector<4x256xf32>, vector<256x128xf32>, vector<4x128xf32> -> vector<4x128xf32>
    %222 = vector.broadcast %19 : vector<1x128xf32> to vector<4x128xf32>
    %223 = arith.addf %221, %222 : vector<4x128xf32>
    %cst_139 = arith.constant 0.000000e+00 : f32
    %224 = vector.broadcast %cst_139 : f32 to vector<4x128xf32>
    %225 = arith.cmpf oge, %223, %224 : vector<4x128xf32>
    %cst_140 = arith.constant 0.00999999977 : f32
    %226 = vector.broadcast %cst_140 : f32 to vector<4x128xf32>
    %227 = arith.mulf %226, %223 : vector<4x128xf32>
    %228 = arith.select %225, %223, %227 : vector<4x128xi1>, vector<4x128xf32>
    %cst_141 = arith.constant dense<0.000000e+00> : vector<4x64xf32>
    %229 = tpu.matmul %228, %16, %cst_141 {dimension_numbers = #tpu.dot_dimension_numbers<[1], [0], [0], [1], [0, 0, 1, 1], [], []>} : vector<4x128xf32>, vector<128x64xf32>, vector<4x64xf32> -> vector<4x64xf32>
    %230 = vector.broadcast %20 : vector<1x64xf32> to vector<4x64xf32>
    %231 = arith.addf %229, %230 : vector<4x64xf32>
    %cst_142 = arith.constant 0.000000e+00 : f32
    %232 = vector.broadcast %cst_142 : f32 to vector<4x64xf32>
    %233 = arith.cmpf oge, %231, %232 : vector<4x64xf32>
    %cst_143 = arith.constant 0.00999999977 : f32
    %234 = vector.broadcast %cst_143 : f32 to vector<4x64xf32>
    %235 = arith.mulf %234, %231 : vector<4x64xf32>
    %236 = arith.select %233, %231, %235 : vector<4x64xi1>, vector<4x64xf32>
    %cst_144 = arith.constant dense<0.000000e+00> : vector<4x8xf32>
    %237 = tpu.matmul %236, %17, %cst_144 {dimension_numbers = #tpu.dot_dimension_numbers<[1], [0], [0], [1], [0, 0, 1, 1], [], []>} : vector<4x64xf32>, vector<64x8xf32>, vector<4x8xf32> -> vector<4x8xf32>
    %238 = vector.broadcast %21 : vector<1x8xf32> to vector<4x8xf32>
    %239 = arith.addf %237, %238 : vector<4x8xf32>
    %c1_145 = arith.constant 1 : index
    %c0_146 = arith.constant 0 : index
    %c0_147 = arith.constant 0 : index
    %240 = vector.load %arg8[%c1_145, %c0_146, %c0_147] : memref<2x4x8xf32, #tpu.memory_space<vmem>>, vector<1x4x8xf32>
    %241 = vector.shape_cast %240 : vector<1x4x8xf32> to vector<4x8xf32>
    %cst_148 = arith.constant 1.000000e+00 : f32
    %242 = vector.broadcast %cst_148 : f32 to vector<4x8xf32>
    %243 = arith.subf %241, %242 : vector<4x8xf32>
    %cst_149 = arith.constant 1.000000e+04 : f32
    %244 = vector.broadcast %cst_149 : f32 to vector<4x8xf32>
    %245 = arith.mulf %243, %244 : vector<4x8xf32>
    %246 = arith.addf %239, %245 : vector<4x8xf32>
    %cst_150 = arith.constant dense<0xFF800000> : vector<4xf32>
    %247 = vector.multi_reduction <maximumf>, %246, %cst_150 [1] : vector<4x8xf32> to vector<4xf32>
    %248 = vector.shape_cast %247 : vector<4xf32> to vector<4x1xf32>
    %249 = vector.broadcast %248 : vector<4x1xf32> to vector<4x8xf32>
    %250 = arith.subf %246, %249 : vector<4x8xf32>
    %251 = math.exp %250 : vector<4x8xf32>
    %cst_151 = arith.constant dense<0.000000e+00> : vector<4xf32>
    %252 = vector.multi_reduction <add>, %251, %cst_151 [1] : vector<4x8xf32> to vector<4xf32>
    %253 = vector.shape_cast %252 : vector<4xf32> to vector<4x1xf32>
    %254 = vector.broadcast %253 : vector<4x1xf32> to vector<4x8xf32>
    %255 = arith.divf %251, %254 : vector<4x8xf32>
    %c1_152 = arith.constant 1 : index
    %c0_153 = arith.constant 0 : index
    %c0_154 = arith.constant 0 : index
    %256 = vector.load %arg15[%c1_152, %c0_153, %c0_154] : memref<2x4x8xf32, #tpu.memory_space<vmem>>, vector<1x4x8xf32>
    %257 = vector.shape_cast %256 : vector<1x4x8xf32> to vector<4x8xf32>
    %258 = vector.shape_cast %255 : vector<4x8xf32> to vector<1x4x8xf32>
    tpu.vector_store %arg15[%c1_152, %c0_153, %c0_154], %258 {strides = array<i32>} : memref<2x4x8xf32, #tpu.memory_space<vmem>>, vector<1x4x8xf32>,
    return
  }
  func.func @transform_0(%arg0: i32) -> (i32, i32, i32) {
    %c0_i32 = arith.constant 0 : i32
    %c0_i32_0 = arith.constant 0 : i32
    %c0_i32_1 = arith.constant 0 : i32
    return %arg0, %c0_i32, %c0_i32_0 : i32, i32, i32
  }
  func.func @transform_1(%arg0: i32) -> (i32, i32, i32) {
    %c0_i32 = arith.constant 0 : i32
    %c0_i32_0 = arith.constant 0 : i32
    %c0_i32_1 = arith.constant 0 : i32
    return %arg0, %c0_i32, %c0_i32_0 : i32, i32, i32
  }
  func.func @transform_2(%arg0: i32) -> (i32, i32, i32) {
    %c0_i32 = arith.constant 0 : i32
    %c0_i32_0 = arith.constant 0 : i32
    %c0_i32_1 = arith.constant 0 : i32
    return %arg0, %c0_i32, %c0_i32_0 : i32, i32, i32
  }
  func.func @transform_3(%arg0: i32) -> (i32, i32, i32) {
    %c0_i32 = arith.constant 0 : i32
    %c0_i32_0 = arith.constant 0 : i32
    %c0_i32_1 = arith.constant 0 : i32
    return %arg0, %c0_i32, %c0_i32_0 : i32, i32, i32
  }
  func.func @transform_4(%arg0: i32) -> (i32, i32, i32) {
    %c0_i32 = arith.constant 0 : i32
    %c0_i32_0 = arith.constant 0 : i32
    %c0_i32_1 = arith.constant 0 : i32
    return %arg0, %c0_i32, %c0_i32_0 : i32, i32, i32
  }
  func.func @transform_5(%arg0: i32) -> (i32, i32, i32) {
    %c0_i32 = arith.constant 0 : i32
    %c0_i32_0 = arith.constant 0 : i32
    %c0_i32_1 = arith.constant 0 : i32
    return %arg0, %c0_i32, %c0_i32_0 : i32, i32, i32
  }
  func.func @transform_6(%arg0: i32) -> (i32, i32, i32) {
    %c0_i32 = arith.constant 0 : i32
    %c0_i32_0 = arith.constant 0 : i32
    %c0_i32_1 = arith.constant 0 : i32
    return %arg0, %c0_i32, %c0_i32_0 : i32, i32, i32
  }
  func.func @transform_7(%arg0: i32) -> (i32, i32, i32) {
    %c0_i32 = arith.constant 0 : i32
    %c0_i32_0 = arith.constant 0 : i32
    %c0_i32_1 = arith.constant 0 : i32
    return %arg0, %c0_i32, %c0_i32_0 : i32, i32, i32
  }
  func.func @transform_8(%arg0: i32) -> (i32, i32) {
    %c0_i32 = arith.constant 0 : i32
    %c0_i32_0 = arith.constant 0 : i32
    %c0_i32_1 = arith.constant 0 : i32
    return %c0_i32, %c0_i32_0 : i32, i32
  }
  func.func @transform_9(%arg0: i32) -> (i32, i32) {
    %c0_i32 = arith.constant 0 : i32
    %c0_i32_0 = arith.constant 0 : i32
    %c0_i32_1 = arith.constant 0 : i32
    return %c0_i32, %c0_i32_0 : i32, i32
  }
  func.func @transform_10(%arg0: i32) -> (i32, i32) {
    %c0_i32 = arith.constant 0 : i32
    %c0_i32_0 = arith.constant 0 : i32
    %c0_i32_1 = arith.constant 0 : i32
    return %c0_i32, %c0_i32_0 : i32, i32
  }
  func.func @transform_11(%arg0: i32) -> (i32, i32) {
    %c0_i32 = arith.constant 0 : i32
    %c0_i32_0 = arith.constant 0 : i32
    %c0_i32_1 = arith.constant 0 : i32
    return %c0_i32, %c0_i32_0 : i32, i32
  }
  func.func @transform_12(%arg0: i32) -> (i32, i32) {
    %c0_i32 = arith.constant 0 : i32
    %c0_i32_0 = arith.constant 0 : i32
    %c0_i32_1 = arith.constant 0 : i32
    return %c0_i32, %c0_i32_0 : i32, i32
  }
  func.func @transform_13(%arg0: i32) -> (i32, i32, i32) {
    %c0_i32 = arith.constant 0 : i32
    %c0_i32_0 = arith.constant 0 : i32
    %c0_i32_1 = arith.constant 0 : i32
    return %arg0, %c0_i32, %c0_i32_0 : i32, i32, i32
  }
  func.func @transform_14(%arg0: i32) -> (i32, i32, i32) {
    %c0_i32 = arith.constant 0 : i32
    %c0_i32_0 = arith.constant 0 : i32
    %c0_i32_1 = arith.constant 0 : i32
    return %arg0, %c0_i32, %c0_i32_0 : i32, i32, i32
  }
}

</mosaic_0001>

<bundles_post_ra>
// kernel: tpu_custom_call.1
= control target key start
LH: loop header
LB: loop body
LE: loop exit
PB: predicated region body
PF: predicated region fallthrough
CT: control target
= control target key end

     0   :  { %s3301_s0 = inlined_call_operand.vmem [shape: f32[4,13,16], index: 0, kind: input, shape index: {}]   ;;  %s3302_s1 = inlined_call_operand.vmem [shape: f32[4,8,4], index: 1, kind: input, shape index: {}]   ;;  %s3303_s2 = inlined_call_operand.vmem [shape: f32[4,8,1], index: 2, kind: input, shape index: {}]   ;;  %s3304_s3 = inlined_call_operand.vmem [shape: f32[4,4,3], index: 3, kind: input, shape index: {}]   ;;  %s3305_s4 = inlined_call_operand.vmem [shape: f32[4,4,8], index: 4, kind: input, shape index: {}]   ;;  %s3306_s5 = inlined_call_operand.vmem [shape: f32[4,1,8], index: 5, kind: input, shape index: {}]   ;;  %s3307_s6 = inlined_call_operand.vmem [shape: f32[4,1,16], index: 6, kind: input, shape index: {}]   ;;  %s3308_s7 = inlined_call_operand.vmem [shape: f32[4,4,8], index: 7, kind: input, shape index: {}]   ;;  %s3309_s8 = inlined_call_operand.vmem [shape: f32[4,16], index: 8, kind: input, shape index: {}]   ;;  %s3310_s9 = inlined_call_operand.vmem [shape: f32[128,32], index: 9, kind: input, shape index: {}]   ;;  %s3311_s10 = inlined_call_operand.vmem [shape: f32[32,4], index: 10, kind: input, shape index: {}]   ;;  %s3312_s11 = inlined_call_operand.vmem [shape: f32[32,32], index: 11, kind: input, shape index: {}]   ;;  %s3313_s12 = inlined_call_operand.hbm [shape: f32[512,256], index: 12, kind: input, shape index: {}]   ;;  %s3314_s13 = inlined_call_operand.hbm [shape: f32[4,1,16], index: 13, kind: output, shape index: {0}]   ;;  %s3315_s14 = inlined_call_operand.hbm [shape: f32[4,4,8], index: 14, kind: output, shape index: {1}]  }
   0x1   :  { %3364 = sst [smem:[#allocation56_spill]] %s3301_s0 }
   0x2   :  { %3365 = sst [smem:[#allocation57_spill]] %s3302_s1 }
   0x3   :  { %3366 = sst [smem:[#allocation58_spill]] %s3303_s2 }
   0x4   :  { %3367 = sst [smem:[#allocation59_spill]] %s3313_s12 }
   0x5   :  { %20 = vsyncpa [#allocation3], 0 }
   0x6   :  { %21 = vsyncpa [#allocation4], 0 }
   0x7   :  { %23 = vsyncpa [#allocation4 + $0x1], 0 }
   0x8   :  { %24 = vsyncpa [#allocation7], 0 }
   0x9   :  { %26 = vsyncpa [#allocation7 + $0x1], 0  ;;  %s2538_s29 = smov 0   ;;  %s2540_s30 = smov 0  }
   0xa   :  { %s2542_s15 = smov 0   ;;  %s2544_s16 = smov 0  }
   0xb LB: > { %3368 = sst [smem:[#allocation11_spill]] %s2446_s15  ;;  %s2559_s17 = sadd.s32 4294967295, %s2450_s16   ;;  %s2450_s16 = sphi %s2544_s16, %s3463_s16   ;;  %s2446_s15 = sphi %s2542_s15, %s3465_s15   ;;  %s2442_s30 = sphi %s2540_s30, %s3467_s30   ;;  %s2438_s29 = sphi %s2538_s29, %s3466_s29  }
   0xc   : > { %s2121_s18 = sadd.s32 4294967294, %s2450_s16   ;;  %s2563_s19 = sadd.s32 1, %s2450_s16  }
   0xd   : > { %3369 = sst [smem:[#allocation12_spill]] %s2563_s19  ;;  %s352_s20 = sadd.s32 1, %s2446_s15 }
   0xe   : > { %s349_s21 = ssub.s32 %s2450_s16, %s2563_s19  ;;  %p362_p0 = scmp.ne.s32.totalorder %s2446_s15, %s2442_s30 }
   0xf   : > { %p350_p1 = scmp.eq.s32.totalorder %s349_s21, 0  ;;  %p363_p2 = scmp.eq.s32.totalorder %s2559_s17, 1 }
  0x10   : > { %p368_p3 = scmp.ne.s32.totalorder %s2442_s30, %s2438_s29  ;;  %p369_p4 = scmp.eq.s32.totalorder %s2121_s18, 1 }
  0x11   : > { %s2574_s22 = scalar_select %p350_p1, %s2446_s15, %s352_s20  }
  0x12   : > { %p2576_p5 = por %p363_p2, %p362_p0  ;;  %p2580_p6 = por %p369_p4, %p368_p3 }
  0x13   : > { %3370 = sst [smem:[#allocation13_spill]] %s2574_s22  ;;  %p2122_p7 = scmp.ge.s32.totalorder %s2450_s16, 1 }
  0x14   : > { %s3372_s24 = scalar_select %p2580_p6, 1, 0 }
  0x15   : > { %p402_p8 = scmp.lt.s32.totalorder %s2450_s16, 3  ;;  %p2249_p9 = scmp.eq.s32.totalorder %s2559_s17, 0 }
  0x16   : > { %3373 = sst [smem:[#allocation14_spill]] %s3372_s24  ;;  %s2452_s28 = smov [#allocation2]  }
  0x17   : > { %p403_p10 = pnand %p2122_p7, %p402_p8  ;;  %s3374_s12 = sld [smem:[#allocation59_spill]] }
  0x18   : > { %s427_s18 = sshll.u32 %s2452_s28, 4  ;;  %s2453_s20 = smov 256   ;;  %s428_s18 = int_to_ptr.vmem [resolvable:$true] %s427_s18 }
  0x19   : > { %p2238_p11 = pneg %p403_p10  ;;  %s2454_s21 = smov 16  }
  0x1a   : > { %514 = sbr.rel (%p403_p10) target bundleno = 2551 (0x9f7), region = 72 }
  0x1b   : > { %p2239_p12 = pnand %p2249_p9, %p2238_p11 }
  0x1d   : > { %s425_s27 = sshll.u32 %s3374_s12, 4  ;;  %s426_s27 = int_to_ptr.hbm [resolvable:$true] %s425_s27 }
  0x1e   : > { %2241 = dma.hbm_to_vmem [thread:$0]  (!%p2239_p12), %s426_s27, 16384, %s428_s18, [#allocation3], %s2453_s20, %s2453_s20, %s2454_s21  }
  0x1f   : > { %2425 = dma.done.wait (%p2249_p9), [#allocation3], 16384  }
  0x20   : > { %2427 = vsyncadd (%p2249_p9), [#allocation3], 4294950912  ;;  %s2597_s25 = sshll.u32 %s2559_s17, 1  ;;  %s3375_s1 = sld [smem:[#allocation57_spill]]  ;;  %vm745_vm0 = vcmask 64512   ;;  %v2620_v2 = vld [vmem:[%s3310_s9 + $0x20] sm:$0xff] }
  0x21   : > { %p601_p13 = scmp.lt.s32.totalorder %s2597_s25, 3  ;;  %s3376_s2 = sld [smem:[#allocation58_spill]]  ;;  %v2625_v3 = vld [vmem:[%s3310_s9 + $0x40] sm:$0xff]  ;;  %vm848_vm1 = vcmask 1044480   ;;  %vm835_vm2 = vcmask 105472   ;;  %v2647_v7 = vld [vmem:[%s3310_s9 + $0x28] sm:$0xff] }
  0x22   : > { %s3377_s0 = sld [smem:[#allocation56_spill]]  ;;  %v2642_v6 = vld [vmem:[%s3310_s9] sm:$0xff]  ;;  %v2652_v8 = vld [vmem:[%s3310_s9 + $0x48] sm:$0xff]  ;;  %v2663_v9 = vld [vmem:[%s3310_s9 + $0x30] sm:$0xff]  ;;  %vm802_vm3 = vcmask 1043456   ;;  %v2455_v16 = vmov 0  }
  0x23   : > { %s2601_s26 = scalar_select %p601_p13, %s2597_s25, 3  ;;  %v2668_v10 = vld [vmem:[%s3310_s9 + $0x50] sm:$0xff]  ;;  %v2677_v11 = vld [vmem:[%s3310_s9 + $0x38] sm:$0xff]  ;;  %v2691_v13 = vld [vmem:[%s3309_s8] sm:$0xf]  ;;  %2296 = vset.pattern.permute.xlu2 %v2455_v16  ;;  %2295 = vset.pattern.permute.xlu1 %v2455_v16  ;;  %vm789_vm4 = vcmask 31744  }
  0x24   : > { %v2682_v12 = vld [vmem:[%s3310_s9 + $0x58] sm:$0xff]  ;;  %2148 = vmatpush.msk.msra.mxu1 %vm802_vm3, %v2691_v13  ;;  %v2698_v14 = vld [vmem:[%s3310_s9 + $0x8] sm:$0xff]  ;;  %v667_v15 = vld [vmem:[%s3311_s10 + $0x10] sm:$0xff]  ;;  %2297 = vset.pattern.permute.xlu0 %v2455_v16  ;;  %v2456_v35 = vmov 1   ;;  %vm991_vm9 = vcmask 261120   ;;  %vm1031_vm12 = vcmask 130048  }
  0x25   : > { %s2133_s28 = sshll.u32 %s2601_s26, 3  ;;  %s2224_s12 = sshll.u32 %s2601_s26, 4  ;;  %959 = vperm.xlu2 %2296, %v667_v15   ;;  %v668_v17 = vld [vmem:[%s3311_s10 + $0x18] sm:$0xff]  ;;  %v2714_v18 = vld [vmem:[%s3310_s9 + $0x10] sm:$0xff]  ;;  %v2731_v25 = vld [vmem:[%s3311_s10] sm:$0xff]  ;;  %vm1145_vm13 = vcmask 1042432  }
  0x26   : > { %s2608_s20 = scalar_lea.vmem %s3375_s1, %s2133_s28  ;;  %964 = vperm.xlu1 %2295, %v668_v17   ;;  %v2721_v19 = vld [vmem:[%s3310_s9 + $0x18] sm:$0xff]  ;;  %v666_v29 = vld [vmem:[%s3311_s10 + $0x8] sm:$0xff]  ;;  %v2457_v17 = vmov 2   ;;  %s2783_s24 = sshll.u32 %s2601_s26, 2  ;;  %vm1141_vm14 = vcmask 23552  }
  0x27   : > { %s2613_s15 = scalar_lea.vmem %s3376_s2, %s2133_s28  ;;  %v744_v0 = vld [vmem:[%s2608_s20] sm:$0xff]  ;;  %s2789_s18 = scalar_lea.vmem %s3305_s4, %s2783_s24 }
  0x28   : > { %v881_v1 = vld [vmem:[%s2613_s15] sm:$0xff]  ;;  %773 = vmatpush.msra.mxu0 %v744_v0  ;;  %s2630_s28 = scalar_lea.vmem %s3377_s0, %s2224_s12  ;;  %s2803_s1 = scalar_lea.vmem %s3304_s3, %s2783_s24 }
  0x29   : > { %909 = vmatpush.msra.mxu3 %v881_v1  ;;  %2144 = vmatmul.msk.f32.vlgmr.msra.gmra.mxu0 %vm745_vm0, %v2620_v2  ;;  %v788_v4 = vld [vmem:[%s2630_s28 + $0x8] sm:$0x1f]  ;;  %v787_v5 = vld [vmem:[%s2630_s28] sm:$0xff]  ;;  %s2834_s2 = scalar_lea.vmem %s3306_s5, %s2601_s26  ;;  %s3096_s12 = scalar_lea.vmem %s3308_s7, %s2783_s24 }
  0x2a   : > { %2158 = vmatmul.msk.f32.vlgmr.msra.gmra.mxu3 %vm745_vm0, %v2625_v3  ;;  %2153 = vmatpush.msk.msra.mxu2 %vm848_vm1, %v788_v4  ;;  %v2756_v4 = vld [vmem:[%s3310_s9 + $0x68] sm:$0xff]  ;;  %s3109_s27 = scalar_lea.vmem %s3307_s6, %s2601_s26  ;;  %s3155_s26 = sand.u32 1, %s2442_s30  }
  0x2b   : > { %s2128_s0 = sshll.u32 %s3155_s26, 3 }
  0x2c   : > { %867 = vmatpush.msra.mxu2 %v787_v5  ;;  %v2761_v5 = vld [vmem:[%s3310_s9 + $0x60] sm:$0xff]  ;;  %s3159_s22 = scalar_lea.vmem [#allocation6], %s2128_s0  ;;  %s2372_s0 = scalar_lea.hbm %s3314_s13, 4 }
  0x2d   : > { %2154 = vmatmul.msk.f32.vlgmr.msra.gmra.mxu2 %vm835_vm2, %v2642_v6 }
  0x31   : > { %2145 = vmatmul.msk.f32.gmra.mxu0 %vm745_vm0, %v2647_v7 }
  0x32   : > { %2159 = vmatmul.msk.f32.gmra.mxu3 %vm745_vm0, %v2652_v8 }
  0x35   : > { %2155 = vmatmul.msk.f32.gmra.mxu2 %vm835_vm2, %v2698_v14 }
  0x39   : > { %2146 = vmatmul.msk.f32.gmra.mxu0 %vm745_vm0, %v2663_v9 }
  0x3a   : > { %2160 = vmatmul.msk.f32.gmra.mxu3 %vm745_vm0, %v2668_v10 }
  0x3d   : > { %2156 = vmatmul.msk.f32.gmra.mxu2 %vm835_vm2, %v2714_v18 }
  0x41   : > { %2147 = vmatmul.msk.f32.gmra.mxu0 %vm745_vm0, %v2677_v11 }
  0x42   : > { %2161 = vmatmul.msk.f32.gmra.mxu3 %vm745_vm0, %v2682_v12 }
  0x45   : > { %2157 = vmatmul.msk.f32.gmra.mxu2 %vm835_vm2, %v2721_v19 }
  0x7f   : > { %v2741_v39 = vpop.permute.xlu2 %959 }
  0x98   : > { %v2738_v33 = vpop.permute.xlu1 %964 }
  0xa6   : > { %v775_v20 = vpop.f32.mrf.mxu0 }
  0xa7   : > { %2149 = vmatmul.msk.f32.vlgmr.msra.gmra.mxu1 %vm789_vm4, %v775_v20 }
  0xad   : > { %v911_v21 = vpop.f32.mrf.mxu3 }
  0xae   : > { %925 = vperm.xlu2 %2296, %v911_v21   ;;  %v778_v22 = vpop.f32.mrf.mxu0 }
  0xaf   : > { %2150 = vmatmul.msk.f32.gmra.mxu1 %vm789_vm4, %v778_v22 }
  0xb0   : > { %v869_v30 = vpop.f32.mrf.mxu2 }
  0xb5   : > { %v914_v23 = vpop.f32.mrf.mxu3 }
  0xb6   : > { %930 = vperm.xlu1 %2295, %v914_v23   ;;  %v781_v24 = vpop.f32.mrf.mxu0  ;;  %2298 = vset.pattern.permute.xlu2 %v2456_v35 }
  0xb7   : > { %2151 = vmatmul.msk.f32.gmra.mxu1 %vm789_vm4, %v781_v24  ;;  %988 = vperm.xlu2 %2298, %v666_v29  }
  0xb8   : > { %v872_v32 = vpop.f32.mrf.mxu2 }
  0xbd   : > { %v917_v26 = vpop.f32.mrf.mxu3 }
  0xbe   : > { %949 = vperm.xlu1 %2295, %v2731_v25   ;;  %935 = vperm.xlu0 %2297, %v917_v26   ;;  %v784_v27 = vpop.f32.mrf.mxu0 }
  0xbf   : > { %2152 = vmatmul.msk.f32.gmra.mxu1 %vm789_vm4, %v784_v27  ;;  %2302 = vset.pattern.permute.xlu2 %v2455_v16 }
  0xc0   : > { %v875_v37 = vpop.f32.mrf.mxu2 }
  0xc5   : > { %v920_v28 = vpop.f32.mrf.mxu3 }
  0xc6   : > { %940 = vperm.xlu0 %2297, %v920_v28   ;;  %2300 = vset.pattern.permute.xlu1 %v2457_v17  ;;  %v2899_v17 = vld [vmem:[#allocation2 + $0xd0] sm:$0xff] }
  0xc7   : > { %1028 = vperm.xlu1 %2300, %v2731_v25  }
  0xc8   : > { %v878_v43 = vpop.f32.mrf.mxu2 }
  0xce   : > { %954 = vperm.xlu0 %2297, %v666_v29  }
  0xcf   : > { %2301 = vset.pattern.permute.xlu1 %v2455_v16 }
  0xd6   : > { %2299 = vset.pattern.permute.xlu0 %v2456_v35 }
  0xd7   : > { %984 = vperm.xlu0 %2299, %v2731_v25  }
  0xdf   : > { %2303 = vset.pattern.permute.xlu0 %v2455_v16  ;;  %v2778_v16 = vld [vmem:[%s3310_s9 + $0x70] sm:$0xff] }
 0x108   : > { %v926_v53 = vpop.permute.xlu2 %925 }
 0x111   : > { %v2771_v22 = vpop.permute.xlu2 %988 }
 0x124   : > { %v823_v31 = vpop.f32.mrf.mxu1 }
 0x125   : > { %v870_v47 = vadd.f32 %v869_v30, %v823_v31  ;;  %v2794_v30 = vld [vmem:[%s3312_s11 + $0x8] sm:$0xff]  ;;  %v1117_v31 = vld [vmem:[%s2789_s18] sm:$0xf] }
 0x127   : > { %v943_v55 = vadd.f32 %v926_v53, %v870_v47  ;;  %v2846_v47 = vld [vmem:[#allocation2 + $0x28] sm:$0xff]  ;;  %v2862_v53 = vld [vmem:[#allocation2 + $0x230] sm:$0xff] }
 0x128   : > { %v931_v40 = vpop.permute.xlu1 %930 }
 0x12c   : > { %v826_v34 = vpop.f32.mrf.mxu1 }
 0x12d   : > { %v873_v44 = vadd.f32 %v872_v32, %v826_v34  ;;  %v2808_v32 = vld [vmem:[%s3312_s11] sm:$0x7] }
 0x12e   : > { %v1116_v34 = vld [vmem:[%s2803_s1] sm:$0xf] }
 0x12f   : > { %v944_v49 = vadd.f32 %v931_v40, %v873_v44  ;;  %v2820_v40 = vld [vmem:[%s3310_s9 + $0x78] sm:$0x1]  ;;  %v2838_v44 = vld [vmem:[#allocation2 + $0x30] sm:$0xff] }
 0x130   : > { %v936_v36 = vpop.permute.xlu0 %935  ;;  %v2748_v54 = vpop.permute.xlu1 %949  ;;  %3379 = vst [vmem:[#allocation16_spill] sm:$0xff] %v2820_v40 }
 0x131   : > { %v967_v58 = vadd.f32 %v2748_v54, %v943_v55  ;;  %3380 = vst [vmem:[#allocation17_spill] sm:$0xff] %v2838_v44  ;;  %v2864_v55 = vld [vmem:[#allocation2 + $0x220] sm:$0xff] }
 0x133   : > { %v975_v0 = vmul.f32 0.01, %v967_v58  ;;  %vm971_vm8 = vcmp.ge.f32.partialorder %v967_v58, 0.0 }
 0x134   : > { %v829_v38 = vpop.f32.mrf.mxu1 }
 0x135   : > { %v876_v41 = vadd.f32 %v875_v37, %v829_v38  ;;  %v979_v15 = vsel %vm971_vm8, %v967_v58, %v975_v0  ;;  %v2871_v58 = vld [vmem:[#allocation2 + $0x210] sm:$0xff]  ;;  %v2889_v0 = vld [vmem:[#allocation2 + $0x1e0] sm:$0xff]  ;;  %vm1317_vm8 = vcmask 523264  }
 0x136   : > { %3385 = vst [vmem:[#allocation22_spill] sm:$0xff] %v2889_v0 }
 0x137   : > { %v945_v45 = vadd.f32 %v936_v36, %v876_v41 }
 0x138   : > { %v941_v42 = vpop.permute.xlu0 %940 }
 0x139   : > { %v969_v50 = vadd.f32 %v2741_v39, %v945_v45  ;;  %v2814_v35 = vpop.permute.xlu1 %1028  ;;  %v2840_v45 = vld [vmem:[#allocation2 + $0x38] sm:$0xff] }
 0x13a   : > { %3378 = vst [vmem:[#allocation15_spill] sm:$0xff] %v2814_v35 }
 0x13b   : > { %v977_v60 = vmul.f32 0.01, %v969_v50  ;;  %vm973_vm6 = vcmp.ge.f32.partialorder %v969_v50, 0.0 }
 0x13c   : > { %v832_v46 = vpop.f32.mrf.mxu1 }
 0x13d   : > { %v879_v48 = vadd.f32 %v878_v43, %v832_v46  ;;  %v981_v63 = vsel %vm973_vm6, %v969_v50, %v977_v60  ;;  %v1169_v43 = vld [vmem:[%s2834_s2] sm:$0x1] }
 0x13e   : > { %v2844_v46 = vld [vmem:[#allocation2 + $0x20] sm:$0xff] }
 0x13f   : > { %v946_v51 = vadd.f32 %v941_v42, %v879_v48  ;;  %v2825_v42 = vld [vmem:[%s3312_s11 + $0x10] sm:$0xff]  ;;  %3381 = vst [vmem:[#allocation18_spill] sm:$0xff] %v2844_v46  ;;  %v2856_v50 = vld [vmem:[#allocation2] sm:$0xff] }
 0x140   : > { %v2746_v52 = vpop.permute.xlu0 %954  ;;  %v2850_v48 = vld [vmem:[#allocation2 + $0x10] sm:$0xff]  ;;  %3383 = vst [vmem:[#allocation20_spill] sm:$0xff] %v2856_v50  ;;  %v2877_v60 = vld [vmem:[#allocation2 + $0x200] sm:$0xff] }
 0x141   : > { %v970_v56 = vadd.f32 %v2738_v33, %v946_v51  ;;  %v968_v57 = vadd.f32 %v2746_v52, %v944_v49  ;;  %3382 = vst [vmem:[#allocation19_spill] sm:$0xff] %v2850_v48  ;;  %v2852_v49 = vld [vmem:[#allocation2 + $0x18] sm:$0xff]  ;;  %v2858_v51 = vld [vmem:[#allocation2 + $0x8] sm:$0xff] }
 0x143   : > { %vm974_vm5 = vcmp.ge.f32.partialorder %v970_v56, 0.0  ;;  %v978_v59 = vmul.f32 0.01, %v970_v56  ;;  %v976_v62 = vmul.f32 0.01, %v968_v57  ;;  %vm972_vm7 = vcmp.ge.f32.partialorder %v968_v57, 0.0 }
 0x145   : > { %v982_v61 = vsel %vm974_vm5, %v970_v56, %v978_v59  ;;  %v980_v1 = vsel %vm972_vm7, %v968_v57, %v976_v62  ;;  %v2867_v56 = vld [vmem:[#allocation2 + $0x130] sm:$0xff]  ;;  %v2869_v57 = vld [vmem:[#allocation2 + $0x120] sm:$0xff] }
 0x146   : > { %1010 = vmatpush.msrb.mxu0 %v982_v61  ;;  %2226 = vmatpush.msrb.mxu2 %v982_v61  ;;  %v2875_v59 = vld [vmem:[#allocation2 + $0x110] sm:$0xff]  ;;  %v2881_v61 = vld [vmem:[#allocation2 + $0x100] sm:$0xff] }
 0x147   : > { %v2883_v62 = vld [vmem:[#allocation2 + $0x1f0] sm:$0xff] }
 0x148   : > { %1011 = vmatpush.msrb.mxu0 %v981_v63  ;;  %2227 = vmatpush.msrb.mxu2 %v981_v63  ;;  %3384 = vst [vmem:[#allocation21_spill] sm:$0xff] %v2883_v62  ;;  %v2887_v63 = vld [vmem:[#allocation2 + $0xf0] sm:$0xff] }
 0x149   : > { %v2769_v20 = vpop.permute.xlu0 %984 }
 0x14a   : > { %1012 = vmatpush.msrb.mxu0 %v980_v1  ;;  %2228 = vmatpush.msrb.mxu2 %v980_v1  ;;  %v2893_v1 = vld [vmem:[#allocation2 + $0xe0] sm:$0xff] }
 0x14c   : > { %1013 = vmatpush.msrb.mxu0 %v979_v15  ;;  %2229 = vmatpush.msrb.mxu2 %v979_v15  ;;  %v2895_v15 = vld [vmem:[#allocation2 + $0x1d0] sm:$0xff] }
 0x14d   : > { %2163 = vmatmul.msk.f32.vlgmr.msrb.gmra.mxu2 %vm991_vm9, %v2756_v4  ;;  %2162 = vmatmul.msk.f32.vlgmr.msrb.gmra.mxu0 %vm991_vm9, %v2761_v5  ;;  %3386 = vst [vmem:[#allocation23_spill] sm:$0xff] %v2895_v15 }
 0x14e   : > { %1136 = vmatpush.msra.mxu2 %v2794_v30  ;;  %1237 = vmatpush.msra.mxu0 %v2840_v45 }
 0x150   : > { %1217 = vmatpush.msrb.mxu2 %v2838_v44  ;;  %1238 = vmatpush.msra.mxu0 %v2846_v47  ;;  %v2941_v44 = vld [vmem:[#allocation2 + $0x90] sm:$0xff] }
 0x152   : > { %1218 = vmatpush.msrb.mxu2 %v2844_v46  ;;  %1239 = vmatpush.msra.mxu0 %v2852_v49 }
 0x154   : > { %1219 = vmatpush.msrb.mxu2 %v2850_v48  ;;  %1240 = vmatpush.msra.mxu0 %v2858_v51 }
 0x155   : > { %2167 = vmatmul.msk.f32.vlgmr.msra.gmra.mxu2 %vm745_vm0, %v1117_v31  ;;  %v2925_v31 = vld [vmem:[#allocation2 + $0x180] sm:$0xff] }
 0x156   : > { %1220 = vmatpush.msrb.mxu2 %v2856_v50  ;;  %3391 = vst [vmem:[#allocation28_spill] sm:$0xff] %v2925_v31  ;;  %v2936_v50 = vld [vmem:[%s3312_s11 + $0x18] ss:$0 sm:$0xff] }
 0x157   : > { %3393 = vst [vmem:[#allocation30_spill] sm:$0xff] %v2936_v50 }
 0x1ca   : > { %v1015_v21 = vpop.f32.mrf.mxu0 }
 0x1cb   : > { %v1016_v23 = vadd.f32 %v1015_v21, %v2769_v20  ;;  %v2901_v21 = vld [vmem:[#allocation2 + $0x1c0] sm:$0xff] }
 0x1cc   : > { %3387 = vst [vmem:[#allocation24_spill] sm:$0xff] %v2901_v21 }
 0x1cd   : > { %v1023_v28 = vmul.f32 0.01, %v1016_v23  ;;  %vm1021_vm11 = vcmp.ge.f32.partialorder %v1016_v23, 0.0 }
 0x1cf   : > { %v1025_v25 = vsel %vm1021_vm11, %v1016_v23, %v1023_v28  ;;  %v2905_v23 = vld [vmem:[#allocation2 + $0xc0] sm:$0xff] }
 0x1d0   : > { %v1018_v24 = vpop.f32.mrf.mxu2 }
 0x1d1   : > { %v1019_v26 = vadd.f32 %v1018_v24, %v2771_v22  ;;  %v2907_v24 = vld [vmem:[#allocation2 + $0x1b0] sm:$0xff] }
 0x1d2   : > { %3388 = vst [vmem:[#allocation25_spill] sm:$0xff] %v2907_v24 }
 0x1d3   : > { %vm1022_vm10 = vcmp.ge.f32.partialorder %v1019_v26, 0.0  ;;  %v1024_v27 = vmul.f32 0.01, %v1019_v26 }
 0x1d5   : > { %v1026_v29 = vsel %vm1022_vm10, %v1019_v26, %v1024_v27  ;;  %v2911_v26 = vld [vmem:[#allocation2 + $0xb0] sm:$0xff]  ;;  %v2913_v27 = vld [vmem:[#allocation2 + $0x1a0] sm:$0xff] }
 0x1d6   : > { %1049 = vmatpush.msrb.mxu1 %v1026_v29  ;;  %3389 = vst [vmem:[#allocation26_spill] sm:$0xff] %v2913_v27  ;;  %v2919_v29 = vld [vmem:[#allocation2 + $0xa0] sm:$0xff] }
 0x1d8   : > { %1050 = vmatpush.msrb.mxu1 %v1025_v25  ;;  %v2921_v25 = vld [vmem:[#allocation2 + $0x190] sm:$0xff] }
 0x1d9   : > { %2164 = vmatmul.msk.f32.vlgmr.msrb.gmra.mxu1 %vm1031_vm12, %v2778_v16  ;;  %3390 = vst [vmem:[#allocation27_spill] sm:$0xff] %v2921_v25 }
 0x1da   : > { %2168 = vmatpush.msk.msra.mxu1 %vm1145_vm13, %v2808_v32 }
 0x1dc   : > { %1251 = vmatpush.msrb.mxu1 %v2867_v56 }
 0x1de   : > { %1252 = vmatpush.msrb.mxu1 %v2869_v57 }
 0x1e0   : > { %1253 = vmatpush.msrb.mxu1 %v2875_v59 }
 0x1e1   : > { %2169 = vmatmul.msk.f32.vlgmr.msra.gmra.mxu1 %vm1141_vm14, %v1116_v34  ;;  %v1138_v34 = vpop.f32.mrf.mxu2 }
 0x1e2   : > { %1254 = vmatpush.msrb.mxu1 %v2881_v61 }
 0x1e4   : > { %1255 = vmatpush.msrb.mxu1 %v2887_v63 }
 0x1e6   : > { %1256 = vmatpush.msrb.mxu1 %v2893_v1 }
 0x1e8   : > { %1257 = vmatpush.msrb.mxu1 %v2899_v17 }
 0x1ea   : > { %1258 = vmatpush.msrb.mxu1 %v2905_v23 }
 0x1ec   : > { %1259 = vmatpush.msrb.mxu1 %v2911_v26 }
 0x1ee   : > { %1260 = vmatpush.msrb.mxu1 %v2919_v29 }
 0x1f0   : > { %1261 = vmatpush.msrb.mxu1 %v2941_v44 }
 0x256   : > { %v1052_v36 = vpop.f32.mrf.mxu1 }
 0x257   : > { %v1053_v37 = vadd.f32 %v1052_v36, %v2814_v35  ;;  %v2970_v35 = vld [vmem:[#allocation2 + $0x320] sm:$0xff] }
 0x258   : > { %3398 = vst [vmem:[#allocation35_spill] sm:$0xff] %v2970_v35 }
 0x259   : > { %vm1055_vm15 = vcmp.ge.f32.partialorder %v1053_v37, 0.0  ;;  %v1056_v38 = vmul.f32 0.01, %v1053_v37 }
 0x25b   : > { %v1057_v41 = vsel %vm1055_vm15, %v1053_v37, %v1056_v38  ;;  %v2929_v37 = vld [vmem:[#allocation2 + $0x170] sm:$0xff] }
 0x25c   : > { %1081 = vmatpush.msrb.mxu3 %v1057_v41  ;;  %3392 = vst [vmem:[#allocation29_spill] sm:$0xff] %v2929_v37 }
 0x25d   : > { %2165 = vmatmul.msk.f32.vlgmr.msrb.gmra.mxu3 %vm745_vm0, %v2820_v40  ;;  %v2943_v40 = vld [vmem:[#allocation2 + $0x160] sm:$0xff] }
 0x25e   : > { %1188 = vmatpush.msra.mxu3 %v2825_v42  ;;  %v1166_v36 = vpop.f32.mrf.mxu1  ;;  %3394 = vst [vmem:[#allocation31_spill] sm:$0xff] %v2943_v40 }
 0x25f   : > { %v1167_v38 = vadd.f32 %v1166_v36, %v1138_v34  ;;  %v2947_v34 = vld [vmem:[#allocation2 + $0x80] sm:$0xff]  ;;  %v2949_v36 = vld [vmem:[#allocation2 + $0x150] sm:$0xff] }
 0x260   : > { %1271 = vmatpush.msrb.mxu3 %v2862_v53  ;;  %3395 = vst [vmem:[#allocation32_spill] sm:$0xff] %v2949_v36  ;;  %1262 = vmatpush.msrb.mxu1 %v2947_v34 }
 0x262   : > { %1272 = vmatpush.msrb.mxu3 %v2864_v55 }
 0x264   : > { %1273 = vmatpush.msrb.mxu3 %v2871_v58 }
 0x265   : > { %2170 = vmatmul.msk.f32.vlgmr.msra.gmra.mxu3 %vm745_vm0, %v1169_v43 }
 0x266   : > { %1274 = vmatpush.msrb.mxu3 %v2877_v60 }
 0x268   : > { %1275 = vmatpush.msrb.mxu3 %v2883_v62 }
 0x26a   : > { %1276 = vmatpush.msrb.mxu3 %v2889_v0 }
 0x26c   : > { %1277 = vmatpush.msrb.mxu3 %v2895_v15 }
 0x26e   : > { %1278 = vmatpush.msrb.mxu3 %v2901_v21 }
 0x270   : > { %1279 = vmatpush.msrb.mxu3 %v2907_v24 }
 0x272   : > { %1280 = vmatpush.msrb.mxu3 %v2913_v27 }
 0x274   : > { %1281 = vmatpush.msrb.mxu3 %v2921_v25  ;;  %v3005_v25 = vld [vmem:[#allocation2 + $0x280] sm:$0xff] }
 0x275   : > { %3409 = vst [vmem:[#allocation46_spill] sm:$0xff] %v3005_v25 }
 0x276   : > { %1282 = vmatpush.msrb.mxu3 %v2925_v31  ;;  %v2987_v31 = vld [vmem:[#allocation2 + $0x2d0] sm:$0xff] }
 0x277   : > { %3403 = vst [vmem:[#allocation40_spill] sm:$0xff] %v2987_v31 }
 0x278   : > { %1283 = vmatpush.msrb.mxu3 %v2929_v37  ;;  %v2984_v37 = vld [vmem:[#allocation2 + $0x2e0] sm:$0xff] }
 0x279   : > { %3402 = vst [vmem:[#allocation39_spill] sm:$0xff] %v2984_v37 }
 0x27a   : > { %1284 = vmatpush.msrb.mxu3 %v2943_v40  ;;  %v2981_v40 = vld [vmem:[#allocation2 + $0x2f0] sm:$0xff] }
 0x27b   : > { %3401 = vst [vmem:[#allocation38_spill] sm:$0xff] %v2981_v40 }
 0x27c   : > { %1285 = vmatpush.msrb.mxu3 %v2949_v36  ;;  %v2978_v36 = vld [vmem:[#allocation2 + $0x300] sm:$0xff] }
 0x27d   : > { %3400 = vst [vmem:[#allocation37_spill] sm:$0xff] %v2978_v36 }
 0x2e0   : > { %v2916_v28 = vpop.f32.mrf.mxu3 }
 0x2e8   : > { %v1190_v41 = vpop.f32.mrf.mxu3 }
 0x2e9   : > { %v1193_v43 = vperm.slane %v1190_v41, 0  ;;  %v2962_v41 = vld [vmem:[#allocation2 + $0x50] sm:$0xff] }
 0x2eb   : > { %v1194_v48 = vadd.f32 %v1193_v43, %v1167_v38  ;;  %v2955_v38 = vld [vmem:[#allocation2 + $0x140] sm:$0xff] }
 0x2ec   : > { %3396 = vst [vmem:[#allocation33_spill] sm:$0xff] %v2955_v38  ;;  %1286 = vmatpush.msrb.mxu3 %v2955_v38  ;;  %v2965_v43 = vld [vmem:[#allocation2 + $0x40] sm:$0xff]  ;;  %v2975_v38 = vld [vmem:[#allocation2 + $0x310] sm:$0xff] }
 0x2ed   : > { %v1196_v46 = vadd.f32 %v2936_v50, %v1194_v48  ;;  %v2953_v48 = vld [vmem:[#allocation2 + $0x70] sm:$0xff]  ;;  %3399 = vst [vmem:[#allocation36_spill] sm:$0xff] %v2975_v38 }
 0x2ee   : > { %1263 = vmatpush.msrb.mxu1 %v2953_v48  ;;  %v2968_v50 = vld [vmem:[#allocation2 + $0x330] sm:$0xff] }
 0x2ef   : > { %2171 = vmatmul.msk.f32.vlgmr.msrb.gmra.mxu2 %vm991_vm9, %v1196_v46  ;;  %2172 = vmatmul.msk.f32.vlgmr.msra.gmra.mxu0 %vm991_vm9, %v1196_v46  ;;  %v2959_v46 = vld [vmem:[#allocation2 + $0x60] sm:$0xff]  ;;  %3397 = vst [vmem:[#allocation34_spill] sm:$0xff] %v2968_v50 }
 0x2f0   : > { %1264 = vmatpush.msrb.mxu1 %v2959_v46  ;;  %1294 = vmatpush.msra.mxu2 %v2968_v50  ;;  %v2995_v50 = vld [vmem:[#allocation2 + $0x2b0] sm:$0xff] }
 0x2f1   : > { %3406 = vst [vmem:[#allocation43_spill] sm:$0xff] %v2995_v50 }
 0x2f2   : > { %1265 = vmatpush.msrb.mxu1 %v2962_v41  ;;  %1295 = vmatpush.msra.mxu2 %v2970_v35  ;;  %v2993_v35 = vld [vmem:[#allocation2 + $0x3c0] ss:$8 sm:$0x3] }
 0x2f3   : > { %3405 = vst [vmem:[#allocation42_spill] sm:$0xff] %v2993_v35  ;;  %v3349_v27 = vperm.slane %v2993_v35, 0 }
 0x2f4   : > { %1266 = vmatpush.msrb.mxu1 %v2965_v43  ;;  %1296 = vmatpush.msra.mxu2 %v2975_v38  ;;  %v2998_v38 = vld [vmem:[#allocation2 + $0x2a0] sm:$0xff] }
 0x2f5   : > { %3407 = vst [vmem:[#allocation44_spill] sm:$0xff] %v2998_v38 }
 0x2f6   : > { %2182 = vmatpush.msk.msra.mxu1 %vm802_vm3, %v2691_v13  ;;  %1297 = vmatpush.msra.mxu2 %v2978_v36  ;;  %v2990_v13 = vld [vmem:[#allocation2 + $0x2c0] sm:$0xff]  ;;  %v3347_v36 = vperm.slane %v2993_v35, 1 }
 0x2f7   : > { %3404 = vst [vmem:[#allocation41_spill] sm:$0xff] %v2990_v13 }
 0x2f8   : > { %1298 = vmatpush.msra.mxu2 %v2981_v40  ;;  %v3002_v40 = vld [vmem:[#allocation2 + $0x290] sm:$0xff] }
 0x2f9   : > { %3408 = vst [vmem:[#allocation45_spill] sm:$0xff] %v3002_v40 }
 0x2fa   : > { %1299 = vmatpush.msra.mxu2 %v2984_v37 }
 0x2fc   : > { %1300 = vmatpush.msra.mxu2 %v2987_v31 }
 0x2fe   : > { %1301 = vmatpush.msra.mxu2 %v2990_v13 }
 0x300   : > { %1302 = vmatpush.msra.mxu2 %v2995_v50 }
 0x302   : > { %1303 = vmatpush.msra.mxu2 %v2998_v38 }
 0x304   : > { %1304 = vmatpush.msra.mxu2 %v3002_v40  ;;  %v3020_v40 = vld [vmem:[#allocation2 + $0x250] sm:$0xff] }
 0x305   : > { %3412 = vst [vmem:[#allocation49_spill] sm:$0xff] %v3020_v40 }
 0x306   : > { %1305 = vmatpush.msra.mxu2 %v3005_v25 }
 0x36c   : > { %v1242_v37 = vpop.f32.mrf.mxu0 }
 0x36d   : > { %v1243_v31 = vadd.f32 %v1242_v37, %v3347_v36  ;;  %v3014_v37 = vld [vmem:[#allocation2 + $0x270] sm:$0xff]  ;;  %v3017_v36 = vld [vmem:[#allocation2 + $0x260] sm:$0xff] }
 0x36e   : > { %3410 = vst [vmem:[#allocation47_spill] sm:$0xff] %v3014_v37  ;;  %1306 = vmatpush.msra.mxu2 %v3014_v37  ;;  %v3032_v37 = vld [vmem:[#allocation2 + $0x3a0] sm:$0xff] }
 0x36f   : > { %vm1246_vm3 = vcmp.ge.f32.partialorder %v1243_v31, 0.0  ;;  %v1248_v13 = vmul.f32 0.01, %v1243_v31  ;;  %3411 = vst [vmem:[#allocation48_spill] sm:$0xff] %v3017_v36 }
 0x370   : > { %1307 = vmatpush.msra.mxu2 %v3017_v36  ;;  %v3030_v36 = vld [vmem:[#allocation2 + $0x3b0] sm:$0xff] }
 0x371   : > { %v1250_v50 = vsel %vm1246_vm3, %v1243_v31, %v1248_v13  ;;  %v2192_v31 = vld [vmem:[%s2613_s15 + $0x8] sm:$0xff]  ;;  %1329 = vmatpush.msrb.mxu0 %v3030_v36  ;;  %s1915_s15 = scalar_lea.hbm %s3314_s13, %s2597_s25  ;;  %s1900_s25 = scalar_lea.sflag [#allocation4], %s3155_s26 }
 0x372   : > { %v1222_v24 = vpop.f32.mrf.mxu2  ;;  %1287 = vmatmul.f32.vlgmr.msrb.gmra.mxu3 %v1250_v50  ;;  %1308 = vmatpush.msra.mxu2 %v3020_v40  ;;  %v3024_v50 = vld [vmem:[#allocation2 + $0x240] sm:$0xff]  ;;  %s3250_s19 = sshll.u32 %s1915_s15, 4  ;;  %s1919_s19 = int_to_ptr.hbm [resolvable:$true] %s3250_s19 }
 0x373   : > { %v1223_v38 = vadd.f32 %v1222_v24, %v3349_v27  ;;  %3413 = vst [vmem:[#allocation50_spill] sm:$0xff] %v3024_v50  ;;  %1330 = vmatpush.msrb.mxu0 %v3032_v37 }
 0x374   : > { %1309 = vmatpush.msra.mxu2 %v3024_v50  ;;  %v3039_v50 = vld [vmem:[#allocation2 + $0x380] sm:$0xff] }
 0x375   : > { %vm1245_vm5 = vcmp.ge.f32.partialorder %v1223_v38, 0.0  ;;  %v1247_v21 = vmul.f32 0.01, %v1223_v38 }
 0x376   : > { %1495 = vmatpush.msrb.mxu2 %v2192_v31  ;;  %v3036_v31 = vld [vmem:[#allocation2 + $0x390] sm:$0xff] }
 0x377   : > { %v1249_v15 = vsel %vm1245_vm5, %v1223_v38, %v1247_v21  ;;  %v3027_v21 = vld [vmem:[#allocation2 + $0x3d0] ss:$0 sm:$0xff]  ;;  %1331 = vmatpush.msrb.mxu0 %v3036_v31 }
 0x378   : > { %1267 = vmatmul.f32.vlgmr.msrb.gmra.mxu1 %v1249_v15  ;;  %3414 = vst [vmem:[#allocation51_spill] sm:$0xff] %v3027_v21 }
 0x379   : > { %1332 = vmatpush.msrb.mxu0 %v3039_v50 }
 0x3f5   : > { %v1268_v15 = vpop.f32.mrf.mxu1  ;;  %v1288_v38 = vpop.f32.mrf.mxu3 }
 0x3f6   : > { %v1269_v24 = vadd.f32 %v1268_v15, %v3027_v21  ;;  %v3042_v15 = vld [vmem:[#allocation2 + $0x370] sm:$0xff] }
 0x3f7   : > { %1333 = vmatpush.msrb.mxu0 %v3042_v15 }
 0x3f8   : > { %v1289_v13 = vadd.f32 %v1288_v38, %v1269_v24  ;;  %v669_v38 = vld [vmem:[%s3311_s10] sm:$0x1] }
 0x3fa   : > { %vm1291_vm6 = vcmp.ge.f32.partialorder %v1289_v13, 0.0  ;;  %v1292_v27 = vmul.f32 0.01, %v1289_v13 }
 0x3fc   : > { %v1293_v35 = vsel %vm1291_vm6, %v1289_v13, %v1292_v27 }
 0x3fd   : > { %1310 = vmatmul.f32.vlgmr.msra.gmra.mxu2 %v1293_v35  ;;  %v2175_v35 = vld [vmem:[%s2608_s20 + $0x8] sm:$0xff] }
 0x3fe   : > { %1674 = vmatpush.msra.mxu2 %v2794_v30  ;;  %v3061_v30 = vld [vmem:[#allocation2 + $0x350] sm:$0xff] }
 0x405   : > { %2193 = vmatmul.msk.f32.vlgmr.msrb.gmra.mxu2 %vm745_vm0, %v2625_v3  ;;  %v3058_v3 = vld [vmem:[#allocation2 + $0x360] sm:$0xff] }
 0x406   : > { %1765 = vmatpush.msrb.mxu2 %v2840_v45  ;;  %1334 = vmatpush.msrb.mxu0 %v3058_v3  ;;  %v3065_v45 = vld [vmem:[#allocation2 + $0x340] sm:$0xff] }
 0x408   : > { %1766 = vmatpush.msrb.mxu2 %v2846_v47  ;;  %1335 = vmatpush.msrb.mxu0 %v3061_v30 }
 0x40a   : > { %1767 = vmatpush.msrb.mxu2 %v2852_v49  ;;  %1336 = vmatpush.msrb.mxu0 %v3065_v45 }
 0x40c   : > { %1768 = vmatpush.msrb.mxu2 %v2858_v51  ;;  %1388 = vmatpush.msra.mxu0 %v2175_v35  ;;  %v2458_v35 = vmov 3  }
 0x40d   : > { %2194 = vmatmul.msk.f32.gmra.mxu2 %vm745_vm0, %v2652_v8  ;;  %v3068_v8 = vld [vmem:[#allocation2 + $0x3e0] ss:$0 sm:$0xff] }
 0x40e   : > { %3415 = vst [vmem:[#allocation52_spill] sm:$0xff] %v3068_v8 }
 0x415   : > { %2195 = vmatmul.msk.f32.gmra.mxu2 %vm745_vm0, %v2668_v10 }
 0x41d   : > { %2196 = vmatmul.msk.f32.gmra.mxu2 %vm745_vm0, %v2682_v12 }
 0x480   : > { %v1311_v10 = vpop.f32.mrf.mxu2 }
 0x481   : > { %v1312_v47 = vadd.f32 %v1311_v10, %v3068_v8  ;;  %v3101_v10 = vld [vmem:[#allocation2 + $0x3f0] ss:$0 sm:$0xff] }
 0x482   : > { %3416 = vst [vmem:[#allocation53_spill] sm:$0xff] %v3101_v10 }
 0x483   : > { %vm1314_vm7 = vcmp.ge.f32.partialorder %v1312_v47, 0.0  ;;  %v1315_v12 = vmul.f32 0.01, %v1312_v47 }
 0x485   : > { %v1316_v49 = vsel %vm1314_vm7, %v1312_v47, %v1315_v12 }
 0x486   : > { %2173 = vmatmul.msk.f32.vlgmr.msrb.gmra.mxu0 %vm1317_vm8, %v1316_v49 }
 0x488   : > { %v1497_v51 = vpop.f32.mrf.mxu2 }
 0x489   : > { %1511 = vperm.xlu0 %2303, %v1497_v51  }
 0x48e   : > { %2176 = vmatmul.msk.f32.vlgmr.msra.gmra.mxu0 %vm745_vm0, %v2620_v2  ;;  %v2181_v2 = vld [vmem:[%s2630_s28 + $0x18] sm:$0x1f] }
 0x48f   : > { %2187 = vmatpush.msk.msra.mxu3 %vm848_vm1, %v2181_v2  ;;  %vm1345_vm1 = vcmask 60416  }
 0x490   : > { %v1500_v27 = vpop.f32.mrf.mxu2 }
 0x496   : > { %2177 = vmatmul.msk.f32.gmra.mxu0 %vm745_vm0, %v2647_v7  ;;  %v2180_v7 = vld [vmem:[%s2630_s28 + $0x10] sm:$0xff] }
 0x497   : > { %1464 = vmatpush.msra.mxu3 %v2180_v7 }
 0x498   : > { %v1503_v24 = vpop.f32.mrf.mxu2  ;;  %2188 = vmatmul.msk.f32.vlgmr.msra.gmra.mxu3 %vm835_vm2, %v2642_v6 }
 0x499   : > { %1521 = vperm.xlu1 %2301, %v1503_v24  }
 0x49e   : > { %2178 = vmatmul.msk.f32.gmra.mxu0 %vm745_vm0, %v2663_v9  ;;  %v1341_v9 = vld [vmem:[%s3096_s12] sm:$0xf] }
 0x4a0   : > { %v1506_v13 = vpop.f32.mrf.mxu2  ;;  %2189 = vmatmul.msk.f32.gmra.mxu3 %vm835_vm2, %v2698_v14 }
 0x4a1   : > { %2304 = vset.pattern.permute.xlu1 %v2458_v35  ;;  %1526 = vperm.xlu2 %2302, %v1506_v13  }
 0x4a2   : > { %1060 = vperm.xlu1 %2304, %v669_v38  }
 0x4a6   : > { %2179 = vmatmul.msk.f32.gmra.mxu0 %vm745_vm0, %v2677_v11  ;;  %v2174_v11 = vadd.f32 -1.0, %v1341_v9 }
 0x4a8   : > { %2190 = vmatmul.msk.f32.gmra.mxu3 %vm835_vm2, %v2714_v18  ;;  %v1343_v6 = vmul.f32 10000.0, %v2174_v11 }
 0x4a9   : > { %1516 = vperm.xlu2 %2302, %v1500_v27  }
 0x4b0   : > { %2191 = vmatmul.msk.f32.gmra.mxu3 %vm835_vm2, %v2721_v19  ;;  %v1086_v19 = vld [vmem:[%s3109_s27] sm:$0x1]  ;;  %vm1090_vm2 = vcmask 122880  }
 0x4b1   : > { %v2166_v27 = vadd.f32 -1.0, %v1086_v19 }
 0x4b3   : > { %v1088_v38 = vmul.f32 10000.0, %v2166_v27 }
 0x503   : > { %v1338_v47 = vpop.f32.mrf.mxu0 }
 0x504   : > { %v1339_v14 = vadd.f32 %v1338_v47, %v3101_v10 }
 0x506   : > { %v1344_v12 = vadd.f32 %v1343_v6, %v1339_v14 }
 0x508   : > { %v1346_v18 = vsel %vm1345_vm1, %v1344_v12, -inf }
 0x509   : > { %1347 = vmax.xlane.f32.xlu1 %v1346_v18 }
 0x50b   : > { %v1390_v49 = vpop.f32.mrf.mxu0  ;;  %v1522_v51 = vpop.permute.xlu1 %1521 }
 0x50c   : > { %2183 = vmatmul.msk.f32.vlgmr.msra.gmra.mxu1 %vm789_vm4, %v1390_v49 }
 0x513   : > { %v1393_v24 = vpop.f32.mrf.mxu0 }
 0x514   : > { %v3113_v13 = vpop.permute.xlu1 %1060  ;;  %2184 = vmatmul.msk.f32.gmra.mxu1 %vm789_vm4, %v1393_v24 }
 0x515   : > { %3417 = vst [vmem:[#allocation54_spill] sm:$0xff] %v3113_v13  ;;  %v1084_v35 = vadd.f32 %v2916_v28, %v3113_v13 }
 0x517   : > { %v3118_v2 = vadd.f32 %v1088_v38, %v1084_v35  ;;  %v1527_v35 = vpop.permute.xlu2 %1526 }
 0x519   : > { %3418 = vst [vmem:[#allocation55_spill] sm:$0xff] %v3118_v2  ;;  %v1091_v7 = vsel %vm1090_vm2, %v3118_v2, -inf }
 0x51a   : > { %1092 = vmax.xlane.f32.xlu2 %v1091_v7 }
 0x51b   : > { %v1396_v9 = vpop.f32.mrf.mxu0  ;;  %v1466_v18 = vpop.f32.mrf.mxu3 }
 0x51c   : > { %2185 = vmatmul.msk.f32.gmra.mxu1 %vm789_vm4, %v1396_v9 }
 0x51f   : > { %v1517_v2 = vpop.permute.xlu2 %1516 }
 0x523   : > { %v1399_v11 = vpop.f32.mrf.mxu0  ;;  %v1469_v27 = vpop.f32.mrf.mxu3 }
 0x524   : > { %2186 = vmatmul.msk.f32.gmra.mxu1 %vm789_vm4, %v1399_v11 }
 0x52b   : > { %v1472_v38 = vpop.f32.mrf.mxu3 }
 0x533   : > { %v1475_v11 = vpop.f32.mrf.mxu3 }
 0x57c   : > { %v1348_v6 = vpop.xlane.xlu1 %1347 }
 0x57d   : > { %v1349_v47 = vsub.f32 %v1344_v12, %v1348_v6 }
 0x57f   : > { %v1350_v14 = vmul.f32 1.442695, %v1349_v47  ;;  %v1512_v47 = vpop.permute.xlu0 %1511 }
 0x581   : > { %2306 = vpow2.f32 %v1350_v14 }
 0x587   : > { %v3124_v49 = vpop.eup %2306 }
 0x588   : > { %v1352_v28 = vsel %vm1345_vm1, %v3124_v49, 0.0 }
 0x589   : > { %v1434_v19 = vpop.f32.mrf.mxu1  ;;  %1353 = vadd.xlane.f32.xlu1 %v1352_v28 }
 0x58a   : > { %v1467_v12 = vadd.f32 %v1466_v18, %v1434_v19  ;;  %v3433_v19 = vld [vmem:[#allocation17_spill] sm:$0xff] }
 0x58c   : > { %v1529_v13 = vadd.f32 %v1512_v47, %v1467_v12  ;;  %v3438_v47 = vld [vmem:[#allocation34_spill] sm:$0xff] }
 0x58e   : > { %v1533_v62 = vadd.f32 %v1529_v13, %v2748_v54 }
 0x590   : > { %vm1537_vm15 = vcmp.ge.f32.partialorder %v1533_v62, 0.0 }
 0x591   : > { %v1437_v24 = vpop.f32.mrf.mxu1 }
 0x592   : > { %v1470_v10 = vadd.f32 %v1469_v27, %v1437_v24 }
 0x594   : > { %v1530_v8 = vadd.f32 %v1517_v2, %v1470_v10  ;;  %v1541_v2 = vmul.f32 0.01, %v1533_v62 }
 0x596   : > { %v1534_v28 = vadd.f32 %v1530_v8, %v2746_v52  ;;  %v3432_v8 = vld [vmem:[#allocation16_spill] sm:$0xff] }
 0x598   : > { %vm1538_vm11 = vcmp.ge.f32.partialorder %v1534_v28, 0.0 }
 0x599   : > { %v1440_v7 = vpop.f32.mrf.mxu1 }
 0x59a   : > { %v1473_v9 = vadd.f32 %v1472_v38, %v1440_v7 }
 0x59c   : > { %v1531_v6 = vadd.f32 %v1522_v51, %v1473_v9  ;;  %v1542_v51 = vmul.f32 0.01, %v1534_v28  ;;  %v3435_v9 = vld [vmem:[#allocation19_spill] sm:$0xff] }
 0x59e   : > { %v1535_v40 = vadd.f32 %v1531_v6, %v2741_v39  ;;  %v1546_v39 = vsel %vm1538_vm11, %v1534_v28, %v1542_v51  ;;  %v3437_v6 = vld [vmem:[#allocation20_spill] sm:$0xff] }
 0x59f   : > { %v3440_v28 = vld [vmem:[#allocation36_spill] sm:$0xff] }
 0x5a0   : > { %v1543_v24 = vmul.f32 0.01, %v1535_v40  ;;  %vm1539_vm10 = vcmp.ge.f32.partialorder %v1535_v40, 0.0  ;;  %v3444_v51 = vld [vmem:[#allocation40_spill] sm:$0xff] }
 0x5a1   : > { %v1443_v14 = vpop.f32.mrf.mxu1 }
 0x5a2   : > { %v1476_v21 = vadd.f32 %v1475_v11, %v1443_v14  ;;  %v1547_v10 = vsel %vm1539_vm10, %v1535_v40, %v1543_v24  ;;  %v3436_v11 = vld [vmem:[#allocation30_spill] sm:$0xff]  ;;  %v3439_v14 = vld [vmem:[#allocation35_spill] sm:$0xff] }
 0x5a3   : > { %v3442_v24 = vld [vmem:[#allocation38_spill] sm:$0xff] }
 0x5a4   : > { %v1532_v25 = vadd.f32 %v1527_v35, %v1476_v21  ;;  %v1545_v21 = vsel %vm1537_vm15, %v1533_v62, %v1541_v2  ;;  %v2205_v62 = vld [vmem:[%s2789_s18 + $0x4] sm:$0xf]  ;;  %v3434_v35 = vld [vmem:[#allocation18_spill] sm:$0xff]  ;;  %v3446_v2 = vld [vmem:[#allocation43_spill] sm:$0xff] }
 0x5a5   : > { %2206 = vmatmul.msk.f32.vlgmr.msra.gmra.mxu2 %vm745_vm0, %v2205_v62 }
 0x5a6   : > { %v1536_v0 = vadd.f32 %v1532_v25, %v2738_v33  ;;  %1856 = vmatpush.msra.mxu2 %v3030_v36  ;;  %v3420_v36 = vld [vmem:[#allocation22_spill] sm:$0xff] }
 0x5a8   : > { %vm1540_vm4 = vcmp.ge.f32.partialorder %v1536_v0, 0.0  ;;  %v1544_v27 = vmul.f32 0.01, %v1536_v0  ;;  %1857 = vmatpush.msra.mxu2 %v3032_v37 }
 0x5aa   : > { %v1548_v18 = vsel %vm1540_vm4, %v1536_v0, %v1544_v27  ;;  %1858 = vmatpush.msra.mxu2 %v3036_v31  ;;  %v3441_v27 = vld [vmem:[#allocation37_spill] sm:$0xff] }
 0x5ab   : > { %1561 = vmatpush.msrb.mxu0 %v1548_v18  ;;  %v3443_v18 = vld [vmem:[#allocation39_spill] sm:$0xff] }
 0x5ac   : > { %1859 = vmatpush.msra.mxu2 %v3039_v50  ;;  %v3431_v50 = vld [vmem:[#allocation15_spill] sm:$0xff] }
 0x5ad   : > { %1562 = vmatpush.msrb.mxu0 %v1547_v10  ;;  %v3445_v10 = vld [vmem:[#allocation41_spill] sm:$0xff] }
 0x5ae   : > { %1860 = vmatpush.msra.mxu2 %v3042_v15 }
 0x5af   : > { %1563 = vmatpush.msrb.mxu0 %v1546_v39  ;;  %v3447_v39 = vld [vmem:[#allocation44_spill] sm:$0xff] }
 0x5b0   : > { %1861 = vmatpush.msra.mxu2 %v3058_v3 }
 0x5b1   : > { %1564 = vmatpush.msrb.mxu0 %v1545_v21  ;;  %v3448_v21 = vld [vmem:[#allocation45_spill] sm:$0xff] }
 0x5b2   : > { %2197 = vmatmul.msk.f32.vlgmr.msrb.gmra.mxu0 %vm991_vm9, %v2761_v5  ;;  %1862 = vmatpush.msra.mxu2 %v3061_v30 }
 0x5b3   : > { %2207 = vmatpush.msk.msra.mxu0 %vm1145_vm13, %v2808_v32 }
 0x5b4   : > { %1863 = vmatpush.msra.mxu2 %v3065_v45 }
 0x5b5   : > { %1779 = vmatpush.msrb.mxu0 %v2867_v56 }
 0x5b7   : > { %1780 = vmatpush.msrb.mxu0 %v2869_v57 }
 0x5b9   : > { %1781 = vmatpush.msrb.mxu0 %v2875_v59 }
 0x5ba   : > { %2198 = vmatmul.msk.f32.gmra.mxu0 %vm991_vm9, %v2756_v4 }
 0x5bb   : > { %1782 = vmatpush.msrb.mxu0 %v2881_v61 }
 0x5bd   : > { %1783 = vmatpush.msrb.mxu0 %v2887_v63  ;;  %v2204_v63 = vld [vmem:[%s2803_s1 + $0x4] sm:$0xf]  ;;  %s2127_s1 = sshll.u32 %s3155_s26, 1 }
 0x5be   : > { %s592_s20 = scalar_lea.vmem [#allocation5], %s2127_s1 }
 0x5bf   : > { %1784 = vmatpush.msrb.mxu0 %v2893_v1  ;;  %s1916_s21 = sshll.u32 %s592_s20, 4  ;;  %s1917_s21 = int_to_ptr.vmem [resolvable:$true] %s1916_s21 }
 0x5c1   : > { %1785 = vmatpush.msrb.mxu0 %v2899_v17 }
 0x5c2   : > { %2208 = vmatmul.msk.f32.vlgmr.msra.gmra.mxu0 %vm1141_vm14, %v2204_v63 }
 0x5c3   : > { %1786 = vmatpush.msrb.mxu0 %v2905_v23 }
 0x5c5   : > { %1787 = vmatpush.msrb.mxu0 %v2911_v26 }
 0x5c7   : > { %1788 = vmatpush.msrb.mxu0 %v2919_v29 }
 0x5c9   : > { %1789 = vmatpush.msrb.mxu0 %v2941_v44 }
 0x5cb   : > { %1790 = vmatpush.msrb.mxu0 %v2947_v34 }
 0x5cd   : > { %1791 = vmatpush.msrb.mxu0 %v2953_v48  ;;  %v3421_v48 = vld [vmem:[#allocation23_spill] sm:$0xff] }
 0x5cf   : > { %1792 = vmatpush.msrb.mxu0 %v2959_v46  ;;  %v3426_v46 = vld [vmem:[#allocation28_spill] sm:$0xff] }
 0x5d1   : > { %1793 = vmatpush.msrb.mxu0 %v2962_v41  ;;  %v3428_v41 = vld [vmem:[#allocation31_spill] sm:$0xff] }
 0x5d3   : > { %1794 = vmatpush.msrb.mxu0 %v2965_v43  ;;  %v3430_v43 = vld [vmem:[#allocation33_spill] sm:$0xff] }
 0x5fc   : > { %v1354_v33 = vpop.xlane.xlu1 %1353 }
 0x5fd   : > { %2308 = vrcp.f32 %v1354_v33  ;;  %v1366_v5 = vand.u32 2147483648, %v1354_v33  ;;  %v1364_v40 = vand.u32 2147483647, %v1354_v33  ;;  %vm1360_vm3 = vweird.f32 %v1354_v33 }
 0x5ff   : > { %v1367_v56 = vor.u32 1.1754944e-38, %v1366_v5  ;;  %vm1365_vm6 = vcmp.eq.f32.partialorder %v1364_v40, 8.507059e+37  ;;  %v3453_v5 = vld [vmem:[#allocation50_spill] sm:$0xff] }
 0x603   : > { %v2309_v52 = vpop.eup %2308 }
 0x604   : > { %v1356_v54 = vmul.f32 %v2309_v52, %v1354_v33  ;;  %vm1361_vm13 = vweird.f32 %v2309_v52  ;;  %v3449_v33 = vld [vmem:[#allocation46_spill] sm:$0xff] }
 0x605   : > { %vm1362_vm5 = vmor %vm1360_vm3, %vm1361_vm13 }
 0x606   : > { %v1357_v4 = vsub.f32 1.0, %v1356_v54  ;;  %v3451_v54 = vld [vmem:[#allocation48_spill] sm:$0xff] }
 0x608   : > { %v1358_v32 = vmul.f32 %v2309_v52, %v1357_v4  ;;  %v3452_v4 = vld [vmem:[#allocation49_spill] sm:$0xff] }
 0x60a   : > { %v1359_v44 = vadd.f32 %v2309_v52, %v1358_v32  ;;  %v2201_v32 = vld [vmem:[%s3109_s27 + $0x1] sm:$0x1] }
 0x60b   : > { %v2202_v40 = vadd.f32 -1.0, %v2201_v32 }
 0x60c   : > { %v1363_v57 = vsel %vm1362_vm5, %v2309_v52, %v1359_v44  ;;  %v3450_v52 = vld [vmem:[#allocation47_spill] sm:$0xff] }
 0x60d   : > { %v1368_v59 = vsel %vm1365_vm6, %v1367_v56, %v1363_v57  ;;  %v1624_v44 = vmul.f32 10000.0, %v2202_v40  ;;  %v3454_v57 = vld [vmem:[#allocation54_spill] sm:$0xff] }
 0x60e   : > { %v1369_v61 = vmul.f32 %v3124_v49, %v1368_v59 }
 0x610   : > { %1370 = vst.msk [vmem:[%s3159_s22] sm:$0xf] %vm1345_vm1, %v1369_v61 }
 0x628   : > { %v1676_v3 = vpop.f32.mrf.mxu2 }
 0x62f   : > { %v1566_v0 = vpop.f32.mrf.mxu0 }
 0x630   : > { %v1567_v1 = vadd.f32 %v1566_v0, %v2769_v20  ;;  %v2209_v20 = vld [vmem:[%s2834_s2 + $0x1] sm:$0x1] }
 0x632   : > { %v1574_v26 = vmul.f32 0.01, %v1567_v1  ;;  %vm1572_vm7 = vcmp.ge.f32.partialorder %v1567_v1, 0.0 }
 0x634   : > { %v1576_v34 = vsel %vm1572_vm7, %v1567_v1, %v1574_v26  ;;  %v3455_v1 = vld [vmem:[#allocation42_spill] sm:$0xff] }
 0x635   : > { %v3457_v26 = vperm.slane %v3455_v1, 1 }
 0x637   : > { %v1569_v17 = vpop.f32.mrf.mxu0 }
 0x638   : > { %v1570_v23 = vadd.f32 %v1569_v17, %v2771_v22  ;;  %v3419_v22 = vld [vmem:[#allocation21_spill] sm:$0xff]  ;;  %v3456_v17 = vperm.slane %v3455_v1, 0 }
 0x63a   : > { %vm1573_vm14 = vcmp.ge.f32.partialorder %v1570_v23, 0.0  ;;  %v1575_v29 = vmul.f32 0.01, %v1570_v23 }
 0x63c   : > { %v1577_v25 = vsel %vm1573_vm14, %v1570_v23, %v1575_v29 }
 0x63d   : > { %1592 = vmatpush.msrb.mxu1 %v1577_v25 }
 0x63f   : > { %1593 = vmatpush.msrb.mxu1 %v1576_v34  ;;  %v1699_v30 = vpop.f32.mrf.mxu0 }
 0x640   : > { %2199 = vmatmul.msk.f32.vlgmr.msrb.gmra.mxu1 %vm1031_vm12, %v2778_v16  ;;  %v3422_v16 = vld [vmem:[#allocation24_spill] sm:$0xff]  ;;  %v1700_v13 = vadd.f32 %v1699_v30, %v1676_v3  ;;  %v3460_v3 = vld [vmem:[#allocation55_spill] sm:$0xff] }
 0x641   : > { %1722 = vmatpush.msra.mxu1 %v2825_v42  ;;  %v3423_v42 = vld [vmem:[#allocation25_spill] sm:$0xff] }
 0x643   : > { %1799 = vmatpush.msrb.mxu1 %v2862_v53  ;;  %v3424_v53 = vld [vmem:[#allocation26_spill] sm:$0xff] }
 0x645   : > { %1800 = vmatpush.msrb.mxu1 %v2864_v55  ;;  %v3425_v55 = vld [vmem:[#allocation27_spill] sm:$0xff] }
 0x647   : > { %1801 = vmatpush.msrb.mxu1 %v2871_v58  ;;  %v3427_v58 = vld [vmem:[#allocation29_spill] sm:$0xff] }
 0x648   : > { %2210 = vmatmul.msk.f32.vlgmr.msra.gmra.mxu1 %vm745_vm0, %v2209_v20 }
 0x649   : > { %1802 = vmatpush.msrb.mxu1 %v2877_v60  ;;  %v3429_v60 = vld [vmem:[#allocation32_spill] sm:$0xff] }
 0x64b   : > { %1803 = vmatpush.msrb.mxu1 %v3419_v22 }
 0x64d   : > { %1804 = vmatpush.msrb.mxu1 %v3420_v36 }
 0x64f   : > { %1805 = vmatpush.msrb.mxu1 %v3421_v48  ;;  %v3458_v48 = vld [vmem:[#allocation51_spill] sm:$0xff] }
 0x651   : > { %1806 = vmatpush.msrb.mxu1 %v3422_v16 }
 0x653   : > { %1807 = vmatpush.msrb.mxu1 %v3423_v42 }
 0x655   : > { %1808 = vmatpush.msrb.mxu1 %v3424_v53 }
 0x657   : > { %1809 = vmatpush.msrb.mxu1 %v3425_v55 }
 0x659   : > { %1810 = vmatpush.msrb.mxu1 %v3426_v46 }
 0x65b   : > { %1811 = vmatpush.msrb.mxu1 %v3427_v58 }
 0x65d   : > { %1812 = vmatpush.msrb.mxu1 %v3428_v41  ;;  %v3459_v41 = vld [vmem:[#allocation52_spill] sm:$0xff] }
 0x65f   : > { %1813 = vmatpush.msrb.mxu1 %v3429_v60 }
 0x661   : > { %1814 = vmatpush.msrb.mxu1 %v3430_v43 }
 0x6bd   : > { %v1595_v37 = vpop.f32.mrf.mxu1 }
 0x6be   : > { %v1596_v31 = vadd.f32 %v1595_v37, %v3431_v50  ;;  %v2214_v50 = vld [vmem:[%s3096_s12 + $0x4] sm:$0xf]  ;;  %s2366_s12 = sshra.s32 %s1919_s19, 4  ;;  %s2367_s12 = int_to_ptr.hbm [resolvable:$true] %s2366_s12 }
 0x6bf   : > { %s2368_s28 = scalar_lea.hbm %s2367_s12, 2  ;;  %p2373_p3 = scmp.lt.s32.totalorder %s2367_s12, %s3314_s13 }
 0x6c0   : > { %vm1598_vm12 = vcmp.ge.f32.partialorder %v1596_v31, 0.0  ;;  %v1599_v15 = vmul.f32 0.01, %v1596_v31  ;;  %p2369_p0 = scmp.ne.s32.totalorder %s2367_s12, %s2368_s28  ;;  %p2374_p4 = scmp.lt.s32.totalorder %s2372_s0, %s2368_s28 }
 0x6c2   : > { %v1600_v45 = vsel %vm1598_vm12, %v1596_v31, %v1599_v15  ;;  %v1093_v31 = vpop.xlane.xlu2 %1092  ;;  %v2215_v15 = vadd.f32 -1.0, %v2214_v50  ;;  %p2370_p1 = pnand %p2369_p0, %p2576_p5  ;;  %p2375_p7 = por %p2374_p4, %p2373_p3 }
 0x6c3   : > { %1616 = vmatpush.msrb.mxu3 %v1600_v45  ;;  %v1094_v30 = vsub.f32 %v3460_v3, %v1093_v31 }
 0x6c4   : > { %2200 = vmatmul.msk.f32.vlgmr.msrb.gmra.mxu3 %vm745_vm0, %v3432_v8  ;;  %v1871_v45 = vmul.f32 10000.0, %v2215_v15  ;;  %p2371_p2 = pneg %p2370_p1 }
 0x6c5   : > { %v1724_v49 = vpop.f32.mrf.mxu1  ;;  %1745 = vmatpush.msra.mxu3 %v3433_v19  ;;  %v1095_v8 = vmul.f32 1.442695, %v1094_v30  ;;  %v3461_v19 = vld [vmem:[#allocation53_spill] sm:$0xff] }
 0x6c6   : > { %v1727_v38 = vperm.slane %v1724_v49, 0  ;;  %p2376_p8 = pnand %p2375_p7, %p2371_p2 }
 0x6c7   : > { %1746 = vmatpush.msra.mxu3 %v3434_v35  ;;  %2310 = vpow2.f32 %v1095_v8 }
 0x6c8   : > { %v1728_v7 = vadd.f32 %v1727_v38, %v1700_v13 }
 0x6c9   : > { %1747 = vmatpush.msra.mxu3 %v3435_v9 }
 0x6ca   : > { %v1729_v12 = vadd.f32 %v3436_v11, %v1728_v7 }
 0x6cb   : > { %1748 = vmatpush.msra.mxu3 %v3437_v6 }
 0x6cc   : > { %2211 = vmatmul.msk.f32.vlgmr.msra.gmra.mxu3 %vm991_vm9, %v1729_v12  ;;  %2212 = vmatmul.msk.f32.vlgmr.msrb.gmra.mxu2 %vm991_vm9, %v1729_v12 }
 0x6cd   : > { %1822 = vmatpush.msrb.mxu3 %v3438_v47  ;;  %v2311_v12 = vpop.eup %2310 }
 0x6ce   : > { %v1097_v6 = vsel %vm1090_vm2, %v2311_v12, 0.0 }
 0x6cf   : > { %1823 = vmatpush.msrb.mxu3 %v3439_v14 }
 0x6d1   : > { %1824 = vmatpush.msrb.mxu3 %v3440_v28 }
 0x6d3   : > { %1825 = vmatpush.msrb.mxu3 %v3441_v27 }
 0x6d5   : > { %1826 = vmatpush.msrb.mxu3 %v3442_v24 }
 0x6d7   : > { %1827 = vmatpush.msrb.mxu3 %v3443_v18 }
 0x6d9   : > { %1828 = vmatpush.msrb.mxu3 %v3444_v51 }
 0x6db   : > { %1829 = vmatpush.msrb.mxu3 %v3445_v10 }
 0x6dd   : > { %1830 = vmatpush.msrb.mxu3 %v3446_v2 }
 0x6df   : > { %1831 = vmatpush.msrb.mxu3 %v3447_v39 }
 0x6e1   : > { %1832 = vmatpush.msrb.mxu3 %v3448_v21 }
 0x6e3   : > { %1833 = vmatpush.msrb.mxu3 %v3449_v33 }
 0x6e5   : > { %1834 = vmatpush.msrb.mxu3 %v3450_v52 }
 0x6e7   : > { %1835 = vmatpush.msrb.mxu3 %v3451_v54 }
 0x6e9   : > { %1836 = vmatpush.msrb.mxu3 %v3452_v4 }
 0x6eb   : > { %1837 = vmatpush.msrb.mxu3 %v3453_v5 }
 0x747   : > { %v1618_v56 = vpop.f32.mrf.mxu3 }
 0x748   : > { %v1619_v59 = vadd.f32 %v1618_v56, %v3454_v57 }
 0x74a   : > { %v1625_v61 = vadd.f32 %v1624_v44, %v1619_v59 }
 0x74c   : > { %v1626_v62 = vsel %vm1090_vm2, %v1625_v61, -inf }
 0x74d   : > { %1627 = vmax.xlane.f32.xlu0 %v1626_v62 }
 0x74f   : > { %v1750_v63 = vpop.f32.mrf.mxu3  ;;  %v1770_v0 = vpop.f32.mrf.mxu2 }
 0x750   : > { %v1751_v23 = vadd.f32 %v1750_v63, %v3456_v17  ;;  %v1771_v29 = vadd.f32 %v1770_v0, %v3457_v26 }
 0x752   : > { %vm1773_vm0 = vcmp.ge.f32.partialorder %v1751_v23, 0.0  ;;  %v1775_v25 = vmul.f32 0.01, %v1751_v23  ;;  %vm1774_vm9 = vcmp.ge.f32.partialorder %v1771_v29, 0.0  ;;  %v1776_v34 = vmul.f32 0.01, %v1771_v29 }
 0x754   : > { %v1777_v20 = vsel %vm1773_vm0, %v1751_v23, %v1775_v25  ;;  %v1778_v22 = vsel %vm1774_vm9, %v1771_v29, %v1776_v34 }
 0x755   : > { %1795 = vmatmul.f32.vlgmr.msrb.gmra.mxu0 %v1777_v20  ;;  %1815 = vmatmul.f32.vlgmr.msrb.gmra.mxu1 %v1778_v22 }
 0x7c0   : > { %v1628_v49 = vpop.xlane.xlu0 %1627 }
 0x7c1   : > { %v1629_v7 = vsub.f32 %v1625_v61, %v1628_v49 }
 0x7c3   : > { %v1630_v11 = vmul.f32 1.442695, %v1629_v7 }
 0x7c5   : > { %2312 = vpow2.f32 %v1630_v11 }
 0x7cb   : > { %v2313_v47 = vpop.eup %2312 }
 0x7cc   : > { %v1632_v14 = vsel %vm1090_vm2, %v2313_v47, 0.0 }
 0x7d2   : > { %v1796_v36 = vpop.f32.mrf.mxu0  ;;  %v1816_v42 = vpop.f32.mrf.mxu1 }
 0x7d3   : > { %v1797_v16 = vadd.f32 %v1796_v36, %v3458_v48 }
 0x7d5   : > { %v1817_v53 = vadd.f32 %v1816_v42, %v1797_v16 }
 0x7d7   : > { %vm1819_vm4 = vcmp.ge.f32.partialorder %v1817_v53, 0.0  ;;  %v1820_v55 = vmul.f32 0.01, %v1817_v53 }
 0x7d9   : > { %v1821_v46 = vsel %vm1819_vm4, %v1817_v53, %v1820_v55 }
 0x7da   : > { %1838 = vmatmul.f32.vlgmr.msrb.gmra.mxu3 %v1821_v46 }
 0x85d   : > { %v1839_v58 = vpop.f32.mrf.mxu3 }
 0x85e   : > { %v1840_v60 = vadd.f32 %v1839_v58, %v3459_v41 }
 0x860   : > { %vm1842_vm10 = vcmp.ge.f32.partialorder %v1840_v60, 0.0  ;;  %v1843_v43 = vmul.f32 0.01, %v1840_v60 }
 0x862   : > { %v1844_v37 = vsel %vm1842_vm10, %v1840_v60, %v1843_v43 }
 0x863   : > { %2213 = vmatmul.msk.f32.vlgmr.msra.gmra.mxu2 %vm1317_vm8, %v1844_v37 }
 0x8e6   : > { %v1865_v13 = vpop.f32.mrf.mxu2 }
 0x8e7   : > { %v1866_v38 = vadd.f32 %v1865_v13, %v3461_v19 }
 0x8e9   : > { %v1872_v35 = vadd.f32 %v1871_v45, %v1866_v38 }
 0x8eb   : > { %v1873_v9 = vsel %vm1345_vm1, %v1872_v35, -inf }
 0x8ec   : > { %1874 = vmax.xlane.f32.xlu2 %v1873_v9 }
 0x8f4   : > { %1098 = vadd.xlane.f32.xlu2 %v1097_v6 }
 0x8fc   : > { %1633 = vadd.xlane.f32.xlu2 %v1632_v14 }
 0x95f   : > { %v1875_v28 = vpop.xlane.xlu2 %1874 }
 0x960   : > { %v1876_v27 = vsub.f32 %v1872_v35, %v1875_v28 }
 0x962   : > { %v1877_v24 = vmul.f32 1.442695, %v1876_v27 }
 0x964   : > { %2314 = vpow2.f32 %v1877_v24 }
 0x967   : > { %v1099_v18 = vpop.xlane.xlu2 %1098 }
 0x968   : > { %2316 = vrcp.f32 %v1099_v18  ;;  %v1111_v52 = vand.u32 2147483648, %v1099_v18  ;;  %v1109_v4 = vand.u32 2147483647, %v1099_v18  ;;  %vm1105_vm11 = vweird.f32 %v1099_v18 }
 0x96a   : > { %v3240_v51 = vpop.eup %2314  ;;  %v1112_v40 = vor.u32 1.1754944e-38, %v1111_v52  ;;  %vm1110_vm13 = vcmp.eq.f32.partialorder %v1109_v4, 8.507059e+37 }
 0x96b   : > { %v1879_v10 = vsel %vm1345_vm1, %v3240_v51, 0.0 }
 0x96c   : > { %1880 = vadd.xlane.f32.xlu0 %v1879_v10 }
 0x96e   : > { %v2317_v2 = vpop.eup %2316 }
 0x96f   : > { %v1101_v39 = vmul.f32 %v2317_v2, %v1099_v18  ;;  %v1634_v21 = vpop.xlane.xlu2 %1633  ;;  %vm1106_vm8 = vweird.f32 %v2317_v2 }
 0x970   : > { %2318 = vrcp.f32 %v1634_v21  ;;  %vm1107_vm15 = vmor %vm1105_vm11, %vm1106_vm8  ;;  %v1646_v62 = vand.u32 2147483648, %v1634_v21  ;;  %v1644_v0 = vand.u32 2147483647, %v1634_v21  ;;  %vm1640_vm5 = vweird.f32 %v1634_v21 }
 0x971   : > { %v1102_v33 = vsub.f32 1.0, %v1101_v39 }
 0x972   : > { %v1647_v17 = vor.u32 1.1754944e-38, %v1646_v62  ;;  %vm1645_vm14 = vcmp.eq.f32.partialorder %v1644_v0, 8.507059e+37 }
 0x973   : > { %v1103_v54 = vmul.f32 %v2317_v2, %v1102_v33 }
 0x975   : > { %v1104_v5 = vadd.f32 %v2317_v2, %v1103_v54 }
 0x976   : > { %v2319_v32 = vpop.eup %2318 }
 0x977   : > { %v1108_v44 = vsel %vm1107_vm15, %v2317_v2, %v1104_v5  ;;  %v1636_v56 = vmul.f32 %v2319_v32, %v1634_v21  ;;  %vm1641_vm3 = vweird.f32 %v2319_v32 }
 0x978   : > { %v1113_v57 = vsel %vm1110_vm13, %v1112_v40, %v1108_v44  ;;  %vm1642_vm6 = vmor %vm1640_vm5, %vm1641_vm3 }
 0x979   : > { %v1114_v59 = vmul.f32 %v2311_v12, %v1113_v57  ;;  %v1637_v61 = vsub.f32 1.0, %v1636_v56 }
 0x97b   : > { %v1638_v63 = vmul.f32 %v2319_v32, %v1637_v61  ;;  %1115 = vst.msk [vmem:[%s592_s20] sm:$0x1] %vm1090_vm2, %v1114_v59 }
 0x97d   : > { %v1639_v1 = vadd.f32 %v2319_v32, %v1638_v63 }
 0x97f   : > { %v1643_v23 = vsel %vm1642_vm6, %v2319_v32, %v1639_v1 }
 0x980   : > { %v1648_v26 = vsel %vm1645_vm14, %v1647_v17, %v1643_v23 }
 0x981   : > { %v1649_v29 = vmul.f32 %v2313_v47, %v1648_v26 }
 0x983   : > { %2203 = vst.msk [vmem:[%s592_s20 + $0x1] sm:$0x1] %vm1090_vm2, %v1649_v29 }
 0x984   : > { %2379 = shalt.err (!%p2376_p8)
}
 0x985   : > { %s2459_s18 = smov 16   ;;  %s2460_s15 = smov 1  }
 0x986   : > { %2234 = dma.vmem_to_hbm [thread:$0]  (%p2576_p5), %s1917_s21, 32, %s1919_s19, %s1900_s25, %s2459_s18, %s2459_s18, %s2460_s15  }
 0x987   : > { %s2225_s20 = sshll.u32 %s2559_s17, 3  ;;  %s1933_s27 = sshll.u32 %s3159_s22, 4  ;;  %s1934_s27 = int_to_ptr.vmem [resolvable:$true] %s1933_s27 }
 0x988   : > { %s1932_s28 = scalar_lea.hbm %s3315_s14, %s2225_s20  ;;  %s1905_s17 = scalar_lea.sflag [#allocation7], %s3155_s26 }
 0x989   : > { %s1935_s21 = sshll.u32 %s1932_s28, 4  ;;  %s2400_s2 = scalar_lea.hbm %s3315_s14, 16  ;;  %s1936_s21 = int_to_ptr.hbm [resolvable:$true] %s1935_s21 }
 0x98a   : > { %s2394_s19 = sshra.s32 %s1936_s21, 4  ;;  %s2395_s19 = int_to_ptr.hbm [resolvable:$true] %s2394_s19 }
 0x98b   : > { %s2396_s25 = scalar_lea.hbm %s2395_s19, 8  ;;  %p2401_p12 = scmp.lt.s32.totalorder %s2395_s19, %s3315_s14 }
 0x98c   : > { %p2397_p9 = scmp.ne.s32.totalorder %s2395_s19, %s2396_s25  ;;  %p2402_p13 = scmp.lt.s32.totalorder %s2400_s2, %s2396_s25 }
 0x98e   : > { %p2398_p10 = pnand %p2397_p9, %p2576_p5  ;;  %p2403_p0 = por %p2402_p13, %p2401_p12 }
 0x990   : > { %p2399_p11 = pneg %p2398_p10 }
 0x992   : > { %p2404_p1 = pnand %p2403_p0, %p2399_p11 }
 0x9df   : > { %v1881_v25 = vpop.xlane.xlu0 %1880 }
 0x9e0   : > { %2320 = vrcp.f32 %v1881_v25  ;;  %v1893_v36 = vand.u32 2147483648, %v1881_v25  ;;  %v1891_v16 = vand.u32 2147483647, %v1881_v25  ;;  %vm1887_vm7 = vweird.f32 %v1881_v25 }
 0x9e2   : > { %v1894_v53 = vor.u32 1.1754944e-38, %v1893_v36  ;;  %vm1892_vm0 = vcmp.eq.f32.partialorder %v1891_v16, 8.507059e+37 }
 0x9e6   : > { %v2321_v34 = vpop.eup %2320 }
 0x9e7   : > { %v1883_v20 = vmul.f32 %v2321_v34, %v1881_v25  ;;  %vm1888_vm2 = vweird.f32 %v2321_v34 }
 0x9e8   : > { %vm1889_vm12 = vmor %vm1887_vm7, %vm1888_vm2 }
 0x9e9   : > { %v1884_v22 = vsub.f32 1.0, %v1883_v20 }
 0x9eb   : > { %v1885_v48 = vmul.f32 %v2321_v34, %v1884_v22 }
 0x9ed   : > { %v1886_v42 = vadd.f32 %v2321_v34, %v1885_v48 }
 0x9ef   : > { %v1890_v55 = vsel %vm1889_vm12, %v2321_v34, %v1886_v42 }
 0x9f0   : > { %v1895_v46 = vsel %vm1892_vm0, %v1894_v53, %v1890_v55 }
 0x9f1   : > { %v1896_v58 = vmul.f32 %v3240_v51, %v1895_v46 }
 0x9f3   : > { %2216 = vst.msk [vmem:[%s3159_s22 + $0x4] sm:$0xf] %vm1345_vm1, %v1896_v58 }
 0x9f4   : > { %2407 = shalt.err (!%p2404_p1)
}
 0x9f5   : > { %s2461_s26 = smov 64   ;;  %s2462_s22 = smov 4  }
 0x9f6   : > { %2235 = dma.vmem_to_hbm [thread:$0]  (%p2576_p5), %s1934_s27, 128, %s1936_s21, %s1905_s17, %s2461_s26, %s2461_s26, %s2462_s22  }
 0x9f7 PF: > { %p2251_p2 = scmp.ge.s32.totalorder %s2450_s16, 2  ;;  %s1950_s24 = sand.u32 1, %s2438_s29  }
 0x9f8   : > { %s1951_s12 = scalar_lea.sflag [#allocation4], %s1950_s24 }
 0x9f9   : > { %p2243_p3 = pnand %p2251_p2, %p2580_p6 }
 0x9fb   : > { %p2244_p4 = pneg %p2243_p3 }
 0x9fd   : > { %2429 = dma.done.wait (%p2244_p4), %s1951_s12, 32  }
 0x9fe   : > { %2431 = vsyncadd (%p2244_p4), %s1951_s12, 4294967264  ;;  %s1961_s28 = scalar_lea.sflag [#allocation7], %s1950_s24 }
 0x9ff   : > { %2433 = dma.done.wait (%p2244_p4), %s1961_s28, 128  }
 0xa00   : > { %2435 = vsyncadd (%p2244_p4), %s1961_s28, 4294967168  ;;  %s3463_s16 = sld [smem:[#allocation12_spill]]  ;;  %s3466_s29 = smov %s2442_s30 }
 0xa01   : > { %s3464_s19 = sld [smem:[#allocation11_spill]] }
 0xa02   : > { %s3465_s15 = sld [smem:[#allocation13_spill]] }
 0xa06   : > { %p29_p5 = scmp.ge.s32.totalorder %s3463_s16, 4  }
 0xa07   : > { %s3467_s30 = smov %s3464_s19 }
 0xa08   :  { %31 = sbr.rel (!%p29_p5) target bundleno = 11 (0xb), region = 161 }
 0xa0d   :  { %1967 = vsyncpa [#allocation3], 1 }
 0xa0e   :  { %1969 = vsyncpa [#allocation3 + $0x1], 1 }
 0xa0f   :  { %1970 = vsyncpa [#allocation4], 1 }
 0xa10   :  { %1972 = vsyncpa [#allocation4 + $0x1], 1 }
 0xa11   :  { %1973 = vsyncpa [#allocation7], 1 }
 0xa12   :  { %1975 = vsyncpa [#allocation7 + $0x1], 1 }

</bundles_post_ra>
